<compile_context>
chip_gen: v7x
topology: tpu7x:2x2x1
jax: 0.10.0
libtpu: 0.0.40
codegen_flags: <defaults>
</compile_context>

<pallas_src>
import jax
import jax.numpy as jnp
from jax.experimental import pallas as pl
from jax.experimental.pallas import tpu as pltpu

SELU_ALPHA = 1.6732632423543772
SELU_SCALE = 1.0507009873554805
BN_EPS = 1e-5

# layer sizes of the torch module
DIMS = [42, 20, 25, 36, 40, 1]


def _selu(x):
    # unselected exp(x) branch can overflow to inf but is never selected -> no NaN
    return SELU_SCALE * jnp.where(x > 0, x, SELU_ALPHA * (jnp.exp(x) - 1.0))


def mlp_kernel(x_ref,
               w1_ref, b1_ref,
               w2_ref, b2_ref,
               w3_ref, b3_ref,
               w4_ref, b4_ref,
               w5_ref, b5_ref,
               o_ref):
    # Transposed layout: activations are [features, batch_tile] (batch on the
    # lane axis). Weights are torch-native [dout, din]; y_T = W @ h_T.
    h = x_ref[...]  # bf16 [42, T]
    hidden = (
        (w1_ref, b1_ref),
        (w2_ref, b2_ref),
        (w3_ref, b3_ref),
        (w4_ref, b4_ref),
    )
    for w_ref, b_ref in hidden:
        # Linear (+ folded eval-mode BatchNorm), f32 accumulation on the MXU.
        y = jnp.dot(w_ref[...], h, preferred_element_type=jnp.float32) + b_ref[...]
        # SELU in f32, then back to bf16 for the next matmul.
        h = _selu(y).astype(jnp.bfloat16)
        # Dropout(p=0.02): identity in eval mode.
    # Final Linear(40, 1) -> lane-dense [1, T] output block.
    o_ref[...] = jnp.dot(w5_ref[...], h, preferred_element_type=jnp.float32) + b5_ref[...]


def mlp_forward(x, params, *, batch_tile=512):
    """x: [B, 42] float32.  params: folded eval-mode params (see fold_params)."""
    B, Din = x.shape
    assert Din == DIMS[0]
    assert batch_tile % 128 == 0, "batch_tile must be lane-aligned (multiple of 128)"

    # Pad batch to a multiple of batch_tile (rows are independent in eval mode).
    B_pad = ((B + batch_tile - 1) // batch_tile) * batch_tile
    if B_pad != B:
        x = jnp.pad(x, ((0, B_pad - B), (0, 0)))

    # Batch on the lane axis; bf16 matmul inputs.
    x_t = x.T.astype(jnp.bfloat16)                      # [42, B_pad]

    flat = []
    for li in range(1, 6):
        flat += [params[f"w{li}"], params[f"b{li}"]]

    grid = (B_pad // batch_tile,)

    def const_spec(p):
        # Constant block index -> the pipeline keeps the (tiny) params resident
        # instead of re-DMAing them every grid step.
        return pl.BlockSpec(p.shape, lambda i: (0, 0))

    in_specs = [pl.BlockSpec((DIMS[0], batch_tile), lambda i: (0, i))]
    in_specs += [const_spec(p) for p in flat]
    out_spec = pl.BlockSpec((DIMS[-1], batch_tile), lambda i: (0, i))

    out_t = pl.pallas_call(
        mlp_kernel,
        out_shape=jax.ShapeDtypeStruct((DIMS[-1], B_pad), jnp.float32),
        grid_spec=pltpu.PrefetchScalarGridSpec(
            num_scalar_prefetch=0,
            grid=grid,
            in_specs=in_specs,
            out_specs=out_spec,
        ),
        compiler_params=pltpu.CompilerParams(
            dimension_semantics=("parallel",)),
    )(x_t, *flat)

    return out_t.T[:B]                                   # [B, 1] float32


def init_params(key):
    """Deterministic synthetic parameters, torch-native layout ([dout, din] etc.)."""
    params = {}
    keys = jax.random.split(key, 64)
    ki = iter(range(64))
    for li in range(1, 6):
        din, dout = DIMS[li - 1], DIMS[li]
        params[f"w{li}"] = (jax.random.normal(keys[next(ki)], (dout, din), jnp.float32)
                            / jnp.sqrt(din))
        params[f"b{li}"] = 0.1 * jax.random.normal(keys[next(ki)], (dout,), jnp.float32)
        if li <= 4:
            params[f"gamma{li}"] = 1.0 + 0.1 * jax.random.normal(
                keys[next(ki)], (dout,), jnp.float32)
            params[f"beta{li}"] = 0.1 * jax.random.normal(keys[next(ki)], (dout,), jnp.float32)
            params[f"mean{li}"] = 0.1 * jax.random.normal(keys[next(ki)], (dout,), jnp.float32)
            params[f"var{li}"] = jax.random.uniform(keys[next(ki)], (dout,), jnp.float32,
                                                    minval=0.5, maxval=1.5)
    return params


def fold_params(raw):
    """Fold eval-mode BatchNorm into the preceding Linear; cast matmul weights to bf16."""
    folded = {}
    for li in range(1, 6):
        w = raw[f"w{li}"]                 # [dout, din]
        b = raw[f"b{li}"]                 # [dout]
        if li <= 4:
            scale = raw[f"gamma{li}"] / jnp.sqrt(raw[f"var{li}"] + BN_EPS)
            shift = raw[f"beta{li}"] - raw[f"mean{li}"] * scale
            w = w * scale[:, None]
            b = b * scale + shift
        folded[f"w{li}"] = w.astype(jnp.bfloat16)            # MXU input
        folded[f"b{li}"] = b[:, None].astype(jnp.float32)    # [dout, 1], f32 add
    return folded


def mlp_reference(x, folded):
    """Pure-JAX reference using the identical bf16-matmul / f32-accumulate math."""
    h = x.T.astype(jnp.bfloat16)
    for li in range(1, 5):
        y = jnp.dot(folded[f"w{li}"], h,
                    preferred_element_type=jnp.float32) + folded[f"b{li}"]
        h = _selu(y).astype(jnp.bfloat16)
    out = jnp.dot(folded["w5"], h, preferred_element_type=jnp.float32) + folded["b5"]
    return out.T


def mlp_reference_f32(x, raw):
    """Full-f32 eval-mode reference of the original torch module (sanity check)."""
    h = x.astype(jnp.float32)
    for li in range(1, 5):
        y = h @ raw[f"w{li}"].T + raw[f"b{li}"]
        scale = raw[f"gamma{li}"] / jnp.sqrt(raw[f"var{li}"] + BN_EPS)
        shift = raw[f"beta{li}"] - raw[f"mean{li}"] * scale
        y = y * scale + shift
        h = _selu(y)
    return h @ raw["w5"].T + raw["b5"]


if __name__ == "__main__":
    key = jax.random.PRNGKey(0)
    pkey, xkey = jax.random.split(key)
    raw = init_params(pkey)
    folded = fold_params(raw)

    B = 2048  # 4 grid steps at the default 512-row tile (keeps the pipeline busy)
    x = jax.random.normal(xkey, (B, DIMS[0]), jnp.float32)

    out = mlp_forward(x, folded, batch_tile=512)
    out = jax.block_until_ready(out)
    assert out.shape == (B, 1), out.shape

    # Tight check vs a reference using the same bf16/f32 mixed-precision math.
    ref = mlp_reference(x, folded)
    err = float(jnp.max(jnp.abs(out - ref)))
    assert jnp.allclose(out, ref, atol=5e-3, rtol=5e-3), err

    # Loose sanity check vs the full-f32 eval-mode forward of the torch module.
    ref32 = mlp_reference_f32(x, raw)
    err32 = float(jnp.max(jnp.abs(out - ref32)))
    assert jnp.allclose(out, ref32, atol=1e-1, rtol=1e-1), err32

    print("KERNEL_OK")
</pallas_src>

<mosaic_0001>
module attributes {stable_mosaic.version = 11 : i64} {
  func.func @mlp_kernel(%arg0: i32, %arg1: memref<42x512xbf16, #tpu.memory_space<vmem>>, %arg2: memref<20x42xbf16, #tpu.memory_space<vmem>>, %arg3: memref<20x1xf32, #tpu.memory_space<vmem>>, %arg4: memref<25x20xbf16, #tpu.memory_space<vmem>>, %arg5: memref<25x1xf32, #tpu.memory_space<vmem>>, %arg6: memref<36x25xbf16, #tpu.memory_space<vmem>>, %arg7: memref<36x1xf32, #tpu.memory_space<vmem>>, %arg8: memref<40x36xbf16, #tpu.memory_space<vmem>>, %arg9: memref<40x1xf32, #tpu.memory_space<vmem>>, %arg10: memref<1x40xbf16, #tpu.memory_space<vmem>>, %arg11: memref<1x1xf32, #tpu.memory_space<vmem>>, %arg12: memref<1x512xf32, #tpu.memory_space<vmem>>) attributes {dimension_semantics = [#tpu.dimension_semantics<parallel>], iteration_bounds = array<i64: 4>, scalar_prefetch = 0 : i64, scratch_operands = 0 : i64, tpu.core_type = #tpu.core_type<tc>, window_params = [{transform_indices = @transform_0, window_bounds = array<i64: 42, 512>}, {pipeline_mode = #tpu.pipeline_mode<synchronous>, transform_indices = @transform_1, window_bounds = array<i64: 20, 42>}, {pipeline_mode = #tpu.pipeline_mode<synchronous>, transform_indices = @transform_2, window_bounds = array<i64: 20, 1>}, {pipeline_mode = #tpu.pipeline_mode<synchronous>, transform_indices = @transform_3, window_bounds = array<i64: 25, 20>}, {pipeline_mode = #tpu.pipeline_mode<synchronous>, transform_indices = @transform_4, window_bounds = array<i64: 25, 1>}, {pipeline_mode = #tpu.pipeline_mode<synchronous>, transform_indices = @transform_5, window_bounds = array<i64: 36, 25>}, {pipeline_mode = #tpu.pipeline_mode<synchronous>, transform_indices = @transform_6, window_bounds = array<i64: 36, 1>}, {pipeline_mode = #tpu.pipeline_mode<synchronous>, transform_indices = @transform_7, window_bounds = array<i64: 40, 36>}, {pipeline_mode = #tpu.pipeline_mode<synchronous>, transform_indices = @transform_8, window_bounds = array<i64: 40, 1>}, {pipeline_mode = #tpu.pipeline_mode<synchronous>, transform_indices = @transform_9, window_bounds = array<i64: 1, 40>}, {pipeline_mode = #tpu.pipeline_mode<synchronous>, transform_indices = @transform_10, window_bounds = array<i64: 1, 1>}, {transform_indices = @transform_11, window_bounds = array<i64: 1, 512>}]} {
    %c0 = arith.constant 0 : index
    %c0_0 = arith.constant 0 : index
    %0 = vector.load %arg1[%c0, %c0_0] : memref<42x512xbf16, #tpu.memory_space<vmem>>, vector<42x512xbf16>
    %c0_1 = arith.constant 0 : index
    %c0_2 = arith.constant 0 : index
    %1 = vector.load %arg2[%c0_1, %c0_2] : memref<20x42xbf16, #tpu.memory_space<vmem>>, vector<20x42xbf16>
    %cst = arith.constant dense<0.000000e+00> : vector<20x512xf32>
    %2 = tpu.matmul %1, %0, %cst {dimension_numbers = #tpu.dot_dimension_numbers<[1], [0], [0], [1], [0, 0, 1, 1], [], []>} : vector<20x42xbf16>, vector<42x512xbf16>, vector<20x512xf32> -> vector<20x512xf32>
    %c0_3 = arith.constant 0 : index
    %c0_4 = arith.constant 0 : index
    %3 = vector.load %arg3[%c0_3, %c0_4] : memref<20x1xf32, #tpu.memory_space<vmem>>, vector<20x1xf32>
    %4 = vector.broadcast %3 : vector<20x1xf32> to vector<20x512xf32>
    %5 = arith.addf %2, %4 : vector<20x512xf32>
    %cst_5 = arith.constant 0.000000e+00 : f32
    %6 = vector.broadcast %cst_5 : f32 to vector<20x512xf32>
    %7 = arith.cmpf ogt, %5, %6 : vector<20x512xf32>
    %8 = math.exp %5 : vector<20x512xf32>
    %cst_6 = arith.constant 1.000000e+00 : f32
    %9 = vector.broadcast %cst_6 : f32 to vector<20x512xf32>
    %10 = arith.subf %8, %9 : vector<20x512xf32>
    %cst_7 = arith.constant 1.67326319 : f32
    %11 = vector.broadcast %cst_7 : f32 to vector<20x512xf32>
    %12 = arith.mulf %11, %10 : vector<20x512xf32>
    %13 = arith.select %7, %5, %12 : vector<20x512xi1>, vector<20x512xf32>
    %cst_8 = arith.constant 1.05070102 : f32
    %14 = vector.broadcast %cst_8 : f32 to vector<20x512xf32>
    %15 = arith.mulf %14, %13 : vector<20x512xf32>
    %16 = arith.truncf %15 : vector<20x512xf32> to vector<20x512xbf16>
    %c0_9 = arith.constant 0 : index
    %c0_10 = arith.constant 0 : index
    %17 = vector.load %arg4[%c0_9, %c0_10] : memref<25x20xbf16, #tpu.memory_space<vmem>>, vector<25x20xbf16>
    %cst_11 = arith.constant dense<0.000000e+00> : vector<25x512xf32>
    %18 = tpu.matmul %17, %16, %cst_11 {dimension_numbers = #tpu.dot_dimension_numbers<[1], [0], [0], [1], [0, 0, 1, 1], [], []>} : vector<25x20xbf16>, vector<20x512xbf16>, vector<25x512xf32> -> vector<25x512xf32>
    %c0_12 = arith.constant 0 : index
    %c0_13 = arith.constant 0 : index
    %19 = vector.load %arg5[%c0_12, %c0_13] : memref<25x1xf32, #tpu.memory_space<vmem>>, vector<25x1xf32>
    %20 = vector.broadcast %19 : vector<25x1xf32> to vector<25x512xf32>
    %21 = arith.addf %18, %20 : vector<25x512xf32>
    %cst_14 = arith.constant 0.000000e+00 : f32
    %22 = vector.broadcast %cst_14 : f32 to vector<25x512xf32>
    %23 = arith.cmpf ogt, %21, %22 : vector<25x512xf32>
    %24 = math.exp %21 : vector<25x512xf32>
    %cst_15 = arith.constant 1.000000e+00 : f32
    %25 = vector.broadcast %cst_15 : f32 to vector<25x512xf32>
    %26 = arith.subf %24, %25 : vector<25x512xf32>
    %cst_16 = arith.constant 1.67326319 : f32
    %27 = vector.broadcast %cst_16 : f32 to vector<25x512xf32>
    %28 = arith.mulf %27, %26 : vector<25x512xf32>
    %29 = arith.select %23, %21, %28 : vector<25x512xi1>, vector<25x512xf32>
    %cst_17 = arith.constant 1.05070102 : f32
    %30 = vector.broadcast %cst_17 : f32 to vector<25x512xf32>
    %31 = arith.mulf %30, %29 : vector<25x512xf32>
    %32 = arith.truncf %31 : vector<25x512xf32> to vector<25x512xbf16>
    %c0_18 = arith.constant 0 : index
    %c0_19 = arith.constant 0 : index
    %33 = vector.load %arg6[%c0_18, %c0_19] : memref<36x25xbf16, #tpu.memory_space<vmem>>, vector<36x25xbf16>
    %cst_20 = arith.constant dense<0.000000e+00> : vector<36x512xf32>
    %34 = tpu.matmul %33, %32, %cst_20 {dimension_numbers = #tpu.dot_dimension_numbers<[1], [0], [0], [1], [0, 0, 1, 1], [], []>} : vector<36x25xbf16>, vector<25x512xbf16>, vector<36x512xf32> -> vector<36x512xf32>
    %c0_21 = arith.constant 0 : index
    %c0_22 = arith.constant 0 : index
    %35 = vector.load %arg7[%c0_21, %c0_22] : memref<36x1xf32, #tpu.memory_space<vmem>>, vector<36x1xf32>
    %36 = vector.broadcast %35 : vector<36x1xf32> to vector<36x512xf32>
    %37 = arith.addf %34, %36 : vector<36x512xf32>
    %cst_23 = arith.constant 0.000000e+00 : f32
    %38 = vector.broadcast %cst_23 : f32 to vector<36x512xf32>
    %39 = arith.cmpf ogt, %37, %38 : vector<36x512xf32>
    %40 = math.exp %37 : vector<36x512xf32>
    %cst_24 = arith.constant 1.000000e+00 : f32
    %41 = vector.broadcast %cst_24 : f32 to vector<36x512xf32>
    %42 = arith.subf %40, %41 : vector<36x512xf32>
    %cst_25 = arith.constant 1.67326319 : f32
    %43 = vector.broadcast %cst_25 : f32 to vector<36x512xf32>
    %44 = arith.mulf %43, %42 : vector<36x512xf32>
    %45 = arith.select %39, %37, %44 : vector<36x512xi1>, vector<36x512xf32>
    %cst_26 = arith.constant 1.05070102 : f32
    %46 = vector.broadcast %cst_26 : f32 to vector<36x512xf32>
    %47 = arith.mulf %46, %45 : vector<36x512xf32>
    %48 = arith.truncf %47 : vector<36x512xf32> to vector<36x512xbf16>
    %c0_27 = arith.constant 0 : index
    %c0_28 = arith.constant 0 : index
    %49 = vector.load %arg8[%c0_27, %c0_28] : memref<40x36xbf16, #tpu.memory_space<vmem>>, vector<40x36xbf16>
    %cst_29 = arith.constant dense<0.000000e+00> : vector<40x512xf32>
    %50 = tpu.matmul %49, %48, %cst_29 {dimension_numbers = #tpu.dot_dimension_numbers<[1], [0], [0], [1], [0, 0, 1, 1], [], []>} : vector<40x36xbf16>, vector<36x512xbf16>, vector<40x512xf32> -> vector<40x512xf32>
    %c0_30 = arith.constant 0 : index
    %c0_31 = arith.constant 0 : index
    %51 = vector.load %arg9[%c0_30, %c0_31] : memref<40x1xf32, #tpu.memory_space<vmem>>, vector<40x1xf32>
    %52 = vector.broadcast %51 : vector<40x1xf32> to vector<40x512xf32>
    %53 = arith.addf %50, %52 : vector<40x512xf32>
    %cst_32 = arith.constant 0.000000e+00 : f32
    %54 = vector.broadcast %cst_32 : f32 to vector<40x512xf32>
    %55 = arith.cmpf ogt, %53, %54 : vector<40x512xf32>
    %56 = math.exp %53 : vector<40x512xf32>
    %cst_33 = arith.constant 1.000000e+00 : f32
    %57 = vector.broadcast %cst_33 : f32 to vector<40x512xf32>
    %58 = arith.subf %56, %57 : vector<40x512xf32>
    %cst_34 = arith.constant 1.67326319 : f32
    %59 = vector.broadcast %cst_34 : f32 to vector<40x512xf32>
    %60 = arith.mulf %59, %58 : vector<40x512xf32>
    %61 = arith.select %55, %53, %60 : vector<40x512xi1>, vector<40x512xf32>
    %cst_35 = arith.constant 1.05070102 : f32
    %62 = vector.broadcast %cst_35 : f32 to vector<40x512xf32>
    %63 = arith.mulf %62, %61 : vector<40x512xf32>
    %64 = arith.truncf %63 : vector<40x512xf32> to vector<40x512xbf16>
    %c0_36 = arith.constant 0 : index
    %c0_37 = arith.constant 0 : index
    %65 = vector.load %arg10[%c0_36, %c0_37] : memref<1x40xbf16, #tpu.memory_space<vmem>>, vector<1x40xbf16>
    %cst_38 = arith.constant dense<0.000000e+00> : vector<1x512xf32>
    %66 = tpu.matmul %65, %64, %cst_38 {dimension_numbers = #tpu.dot_dimension_numbers<[1], [0], [0], [1], [0, 0, 1, 1], [], []>} : vector<1x40xbf16>, vector<40x512xbf16>, vector<1x512xf32> -> vector<1x512xf32>
    %c0_39 = arith.constant 0 : index
    %c0_40 = arith.constant 0 : index
    %67 = vector.load %arg11[%c0_39, %c0_40] : memref<1x1xf32, #tpu.memory_space<vmem>>, vector<1x1xf32>
    %68 = vector.broadcast %67 : vector<1x1xf32> to vector<1x512xf32>
    %69 = arith.addf %66, %68 : vector<1x512xf32>
    %c0_41 = arith.constant 0 : index
    %c0_42 = arith.constant 0 : index
    %70 = vector.load %arg12[%c0_41, %c0_42] : memref<1x512xf32, #tpu.memory_space<vmem>>, vector<1x512xf32>
    tpu.vector_store %arg12[%c0_41, %c0_42], %69 {strides = array<i32>} : memref<1x512xf32, #tpu.memory_space<vmem>>, vector<1x512xf32>,
    return
  }
  func.func @transform_0(%arg0: i32) -> (i32, i32) {
    %c0_i32 = arith.constant 0 : i32
    %c0_i32_0 = arith.constant 0 : i32
    return %c0_i32, %arg0 : i32, i32
  }
  func.func @transform_1(%arg0: i32) -> (i32, i32) {
    %c0_i32 = arith.constant 0 : i32
    %c0_i32_0 = arith.constant 0 : i32
    %c0_i32_1 = arith.constant 0 : i32
    return %c0_i32, %c0_i32_0 : i32, i32
  }
  func.func @transform_2(%arg0: i32) -> (i32, i32) {
    %c0_i32 = arith.constant 0 : i32
    %c0_i32_0 = arith.constant 0 : i32
    %c0_i32_1 = arith.constant 0 : i32
    return %c0_i32, %c0_i32_0 : i32, i32
  }
  func.func @transform_3(%arg0: i32) -> (i32, i32) {
    %c0_i32 = arith.constant 0 : i32
    %c0_i32_0 = arith.constant 0 : i32
    %c0_i32_1 = arith.constant 0 : i32
    return %c0_i32, %c0_i32_0 : i32, i32
  }
  func.func @transform_4(%arg0: i32) -> (i32, i32) {
    %c0_i32 = arith.constant 0 : i32
    %c0_i32_0 = arith.constant 0 : i32
    %c0_i32_1 = arith.constant 0 : i32
    return %c0_i32, %c0_i32_0 : i32, i32
  }
  func.func @transform_5(%arg0: i32) -> (i32, i32) {
    %c0_i32 = arith.constant 0 : i32
    %c0_i32_0 = arith.constant 0 : i32
    %c0_i32_1 = arith.constant 0 : i32
    return %c0_i32, %c0_i32_0 : i32, i32
  }
  func.func @transform_6(%arg0: i32) -> (i32, i32) {
    %c0_i32 = arith.constant 0 : i32
    %c0_i32_0 = arith.constant 0 : i32
    %c0_i32_1 = arith.constant 0 : i32
    return %c0_i32, %c0_i32_0 : i32, i32
  }
  func.func @transform_7(%arg0: i32) -> (i32, i32) {
    %c0_i32 = arith.constant 0 : i32
    %c0_i32_0 = arith.constant 0 : i32
    %c0_i32_1 = arith.constant 0 : i32
    return %c0_i32, %c0_i32_0 : i32, i32
  }
  func.func @transform_8(%arg0: i32) -> (i32, i32) {
    %c0_i32 = arith.constant 0 : i32
    %c0_i32_0 = arith.constant 0 : i32
    %c0_i32_1 = arith.constant 0 : i32
    return %c0_i32, %c0_i32_0 : i32, i32
  }
  func.func @transform_9(%arg0: i32) -> (i32, i32) {
    %c0_i32 = arith.constant 0 : i32
    %c0_i32_0 = arith.constant 0 : i32
    %c0_i32_1 = arith.constant 0 : i32
    return %c0_i32, %c0_i32_0 : i32, i32
  }
  func.func @transform_10(%arg0: i32) -> (i32, i32) {
    %c0_i32 = arith.constant 0 : i32
    %c0_i32_0 = arith.constant 0 : i32
    %c0_i32_1 = arith.constant 0 : i32
    return %c0_i32, %c0_i32_0 : i32, i32
  }
  func.func @transform_11(%arg0: i32) -> (i32, i32) {
    %c0_i32 = arith.constant 0 : i32
    %c0_i32_0 = arith.constant 0 : i32
    return %c0_i32, %arg0 : i32, i32
  }
}

</mosaic_0001>

<bundles_post_ra>
// kernel: tpu_custom_call.1
= control target key start
LH: loop header
LB: loop body
LE: loop exit
PB: predicated region body
PF: predicated region fallthrough
CT: control target
= control target key end

     0   :  { %s3239_s0 = inlined_call_operand.hbm [shape: bf16[42,2048], index: 0, kind: input, shape index: {}]   ;;  %s3240_s1 = inlined_call_operand.vmem [shape: bf16[20,42], index: 1, kind: input, shape index: {}]   ;;  %s3241_s2 = inlined_call_operand.vmem [shape: f32[20,1], index: 2, kind: input, shape index: {}]   ;;  %s3242_s3 = inlined_call_operand.vmem [shape: bf16[25,20], index: 3, kind: input, shape index: {}]   ;;  %s3243_s4 = inlined_call_operand.vmem [shape: f32[25,1], index: 4, kind: input, shape index: {}]   ;;  %s3244_s5 = inlined_call_operand.vmem [shape: bf16[36,25], index: 5, kind: input, shape index: {}]   ;;  %s3245_s6 = inlined_call_operand.vmem [shape: f32[36,1], index: 6, kind: input, shape index: {}]   ;;  %s3246_s7 = inlined_call_operand.vmem [shape: bf16[40,36], index: 7, kind: input, shape index: {}]   ;;  %s3247_s8 = inlined_call_operand.vmem [shape: f32[40,1], index: 8, kind: input, shape index: {}]   ;;  %s3248_s9 = inlined_call_operand.vmem [shape: bf16[1,40], index: 9, kind: input, shape index: {}]   ;;  %s3249_s10 = inlined_call_operand.<no memory space> [shape: f32[1,1], index: 10, kind: input, shape index: {}]   ;;  %s3250_s11 = inlined_call_operand.hbm [shape: f32[1,2048], index: 11, kind: output, shape index: {}]  }
   0x1   :  { %v16_v0 = vstv %s3249_s10 }
   0x2   :  { %17 = vst [vmem:[#allocation2] sm:$0x1] %v16_v0 }
   0x3   :  { %18 = vsyncpa [#allocation4], 0 }
   0x4   :  { %20 = vsyncpa [#allocation4 + $0x1], 0 }
   0x5   :  { %21 = vsyncpa [#allocation5], 0 }
   0x6   :  { %23 = vsyncpa [#allocation5 + $0x1], 0  ;;  %s2447_s19 = smov 0   ;;  %s2449_s20 = smov 0  }
   0x7   :  { %s2451_s21 = smov 0   ;;  %s2453_s22 = smov 0  }
   0x8 LB: > { %3253 = sst [smem:[#allocation9_spill]] %s2370_s21  ;;  %s2468_s10 = sadd.s32 4294967295, %s2374_s22   ;;  %s2374_s22 = sphi %s2453_s22, %s3266_s22   ;;  %s2370_s21 = sphi %s2451_s21, %s3263_s21   ;;  %s2366_s20 = sphi %s2449_s20, %s3265_s20   ;;  %s2362_s19 = sphi %s2447_s19, %s3264_s19  }
   0x9   : > { %s1924_s23 = sadd.s32 4294967294, %s2374_s22   ;;  %s2472_s24 = sadd.s32 1, %s2374_s22  }
   0xa   : > { %s36_s25 = sadd.s32 1, %s2370_s21  ;;  %s33_s26 = ssub.s32 %s2374_s22, %s2472_s24 }
   0xb   : > { %p43_p0 = scmp.ne.s32.totalorder %s2370_s21, %s2366_s20  ;;  %p34_p1 = scmp.eq.s32.totalorder %s33_s26, 0 }
   0xc   : > { %p44_p2 = scmp.eq.s32.totalorder %s2374_s22, 0  ;;  %p49_p3 = scmp.ne.s32.totalorder %s2366_s20, %s2362_s19 }
   0xd   : > { %p50_p4 = scmp.eq.s32.totalorder %s2468_s10, 0  ;;  %p283_p7 = scmp.eq.s32.totalorder %s2468_s10, 3 }
   0xe   : > { %s2484_s27 = scalar_select %p34_p1, %s2370_s21, %s36_s25  }
   0xf   : > { %p45_p5 = por %p44_p2, %p43_p0  ;;  %p2486_p6 = por %p50_p4, %p49_p3 }
  0x10   : > { %3254 = sst [smem:[#allocation10_spill]] %s2484_s27  ;;  %p289_p8 = scmp.eq.s32.totalorder %s1924_s23, 3 }
  0x11   : > { %p2072_p9 = scmp.lt.s32.totalorder %s2374_s22, 4  ;;  %p2492_p10 = por %p283_p7, %p43_p0 }
  0x12   : > { %p2496_p11 = por %p289_p8, %p49_p3  ;;  %s339_s12 = sand.u32 1, %s2370_s21  }
  0x13   : > { %s3256_s29 = scalar_select %p2492_p10, 1, 0 }
  0x14   : > { %s3257_s30 = scalar_select %p2496_p11, 1, 0 }
  0x15   : > { %s2056_s13 = sshll.u32 %s2374_s22, 8  ;;  %s2058_s14 = smul.u32 96, %s339_s12 }
  0x16   : > { %s2505_s17 = scalar_lea.hbm %s3239_s0, %s2056_s13  ;;  %p2507_p12 = pnand %p2072_p9, %p45_p5 }
  0x17   : > { %s343_s23 = scalar_lea.vmem [#allocation3], %s2058_s14  ;;  %s2514_s26 = scalar_lea.sflag [#allocation4], %s339_s12 }
  0x18   : > { %s350_s25 = sshll.u32 %s343_s23, 4  ;;  %s2278_s15 = scalar_lea.hbm %s2505_s17, 1536  ;;  %s2511_s25 = int_to_ptr.vmem [resolvable:$true] %s350_s25 }
  0x19   : > { %p2279_p0 = scmp.ne.s32.totalorder %s2505_s17, %s2278_s15  ;;  %p2280_p1 = pneg %p2507_p12 }
  0x1a   : > { %s2283_s27 = scalar_lea.hbm %s3239_s0, 6144  ;;  %p2284_p4 = scmp.lt.u32.totalorder %s2505_s17, %s3239_s0 }
  0x1b   : > { %p2281_p2 = pnand %p2280_p1, %p2279_p0  ;;  %p2285_p5 = scmp.lt.u32.totalorder %s2283_s27, %s2278_s15 }
  0x1c   : > { %p2287_p8 = scmp.lt.u32.totalorder %s2278_s15, %s2505_s17 }
  0x1d   : > { %p2282_p3 = pneg %p2281_p2  ;;  %p2286_p7 = por %p2285_p5, %p2284_p4 }
  0x1f   : > { %p2288_p9 = por %p2287_p8, %p2286_p7 }
  0x21   : > { %p2289_p13 = pnand %p2288_p9, %p2282_p3 }
  0x23   : > { %2292 = shalt.err (!%p2289_p13)
}
  0x24   : > { %s2293_s12 = scalar_lea.vmem %s2511_s25, 1536  ;;  %s2376_s23 = smov [#allocation3]  }
  0x25   : > { %p2294_p0 = scmp.ne.s32.totalorder %s2511_s25, %s2293_s12  ;;  %s2298_s13 = sshll.u32 %s2376_s23, 4  ;;  %s2299_s13 = int_to_ptr.vmem [resolvable:$false] %s2298_s13 }
  0x26   : > { %s2300_s21 = scalar_lea.vmem %s2299_s13, 3072  ;;  %p2301_p10 = scmp.lt.s32.totalorder %s2511_s25, %s2299_s13 }
  0x27   : > { %p2296_p2 = pnand %p2294_p0, %p2280_p1  ;;  %p2302_p4 = scmp.lt.s32.totalorder %s2300_s21, %s2293_s12 }
  0x29   : > { %p2297_p11 = pneg %p2296_p2  ;;  %p2303_p5 = por %p2302_p4, %p2301_p10 }
  0x2b   : > { %p2304_p7 = pnand %p2303_p5, %p2297_p11 }
  0x2d   : > { %2307 = shalt.err (!%p2304_p7)
}
  0x2e   : > { %s2377_s27 = smov 1024   ;;  %s2378_s15 = smov 256  }
  0x2f   : > { %s2379_s16 = smov 16   ;;  %p358_p13 = scmp.lt.s32.totalorder %s2374_s22, 5 }
  0x30   : > { %2067 = dma.hbm_to_vmem [thread:$0]  (!%p2507_p12), %s2505_s17, 1536, %s2511_s25, %s2514_s26, %s2377_s27, %s2378_s15, %s2379_s16  }
  0x31   : > { %p3259_p1 = scmp.ge.s32.totalorder %s2374_s22, 1 }
  0x33   : > { %p359_p3 = pnand %p3259_p1, %p358_p13 }
  0x34   : > { %s2546_s14 = sand.u32 (!%p359_p3), 1, %s2366_s20  }
  0x35   : > { %362 = sbr.rel (%p359_p3) target bundleno = 1367 (0x557), region = 64  ;;  %s365_s23 = scalar_lea.sflag (!%p359_p3), [#allocation4], %s2546_s14 }
  0x36   : > { %s2059_s12 = smul.u32 (!%p359_p3), 96, %s2546_s14 }
  0x38   : > { %s368_s13 = scalar_lea.vmem (!%p359_p3), [#allocation3], %s2059_s12 }
  0x3c   : > { %2353 = dma.done.wait (%p2486_p6), %s365_s23, 1536  }
  0x3d   : > { %2355 = vsyncadd (%p2486_p6), %s365_s23, 4294965760  ;;  %v2380_v1 = vmov 0   ;;  %v2114_v2 = vld [vmem:[%s368_s13 + $0x4] ss:$16 sps:$4 sm:$0xff]   ;;  %v2116_v3 = vld [vmem:[%s368_s13 + $0xc] ss:$16 sps:$4 sm:$0xff]  }
  0x3e   : > { %559 = vmatprep.mubr.bf16.mxu0 %v2380_v1  ;;  %610 = vmatprep.mubr.bf16.mxu1 %v2380_v1  ;;  %v2118_v4 = vld [vmem:[%s368_s13] ss:$16 sps:$4 sm:$0xff]   ;;  %v2119_v5 = vld [vmem:[%s368_s13 + $0x8] ss:$16 sps:$4 sm:$0xff]   ;;  %v2120_v6 = vld [vmem:[%s368_s13 + $0x24] ss:$16 sps:$4 sm:$0xff]  }
  0x3f   : > { %2112 = vset.pattern.permute.xlu0 %v2380_v1  ;;  %2113 = vset.pattern.permute.xlu1 %v2380_v1  ;;  %v2122_v7 = vld [vmem:[%s368_s13 + $0x2c] ss:$16 sps:$4 sm:$0xff]   ;;  %v2124_v8 = vld [vmem:[%s368_s13 + $0x20] ss:$16 sps:$4 sm:$0xff]   ;;  %v2125_v9 = vld [vmem:[%s368_s13 + $0x28] ss:$16 sps:$4 sm:$0xff]  }
  0x40   : > { %527 = vmatprep.subr.bf16.mxu0 %v2114_v2  ;;  %578 = vmatprep.subr.bf16.mxu1 %v2116_v3  ;;  %vm514_vm0 = vcmask 1044480   ;;  %v2126_v10 = vld [vmem:[%s368_s13 + $0x44] ss:$16 sps:$4 sm:$0x1f]   ;;  %v427_v19 = vld [vmem:[%s3241_s2 + $0x10] sm:$0xf] }
  0x41   : > { %528 = vmatpush1.bf16.msra.mxu0 %v2118_v4  ;;  %579 = vmatpush1.bf16.msra.mxu1 %v2119_v5  ;;  %v2128_v11 = vld [vmem:[%s368_s13 + $0x4c] ss:$16 sps:$4 sm:$0x1f]   ;;  %v2130_v12 = vld [vmem:[%s368_s13 + $0x40] ss:$16 sps:$4 sm:$0x1f]  }
  0x42   : > { %529 = vmatprep.subr.bf16.mxu0 %v2120_v6  ;;  %580 = vmatprep.subr.bf16.mxu1 %v2122_v7  ;;  %v2131_v13 = vld [vmem:[%s368_s13 + $0x48] ss:$16 sps:$4 sm:$0x1f]   ;;  %v516_v14 = vsel %vm514_vm0, %v2130_v12, 0  ;;  %v425_v15 = vld [vmem:[%s3241_s2] sm:$0xff]  ;;  %vm507_vm1 = vcmask 343040  }
  0x43   : > { %v522_v16 = vsel %vm514_vm0, %v2131_v13, 0  ;;  %430 = vperm.xlu0 %2112, %v425_v15   ;;  %v2132_v17 = vld [vmem:[%s3240_s1] sm:$0xff]   ;;  %v426_v18 = vld [vmem:[%s3241_s2 + $0x8] sm:$0xff]  ;;  %440 = vperm.xlu1 %2113, %v427_v19   ;;  %v727_v22 = vld [vmem:[%s3243_s4 + $0x10] sm:$0xff]  ;;  %vm766_vm13 = vcmask 1041408   ;;  %vm759_vm15 = vcmask 162816  }
  0x44   : > { %v725_v20 = vld [vmem:[%s3243_s4] sm:$0xff]  ;;  %v726_v21 = vld [vmem:[%s3243_s4 + $0x8] sm:$0xff]  ;;  %v728_v24 = vld [vmem:[%s3243_s4 + $0x18] sm:$0x1]  ;;  %s1930_s16 = sshll.u32 %s2546_s14, 2  ;;  %s2057_s12 = sshll.u32 %s2468_s10, 6 }
  0x45   : > { %530 = vmatpush1.bf16.msra.mxu0 %v2124_v8  ;;  %581 = vmatpush1.bf16.msra.mxu1 %v2125_v9  ;;  %v2133_v23 = vld [vmem:[%s3240_s1 + $0x8] ss:$0 sps:$4 sm:$0x33]   ;;  %v1010_v25 = vld [vmem:[%s3245_s6] sm:$0xff]  ;;  %v1012_v27 = vld [vmem:[%s3245_s6 + $0x10] sm:$0xff]  ;;  %s406_s23 = scalar_lea.vmem [#allocation6], %s1930_s16  ;;  %s3196_s18 = scalar_lea.hbm %s3250_s11, %s2057_s12 }
  0x46   : > { %1945 = vmatprep.subr.msk.bf16.mxu0 %vm514_vm0, %v2126_v10  ;;  %1948 = vmatprep.subr.msk.bf16.mxu1 %vm514_vm0, %v2128_v11  ;;  %v1011_v26 = vld [vmem:[%s3245_s6 + $0x8] sm:$0xff]  ;;  %v1013_v28 = vld [vmem:[%s3245_s6 + $0x18] sm:$0xff]  ;;  %v1014_v29 = vld [vmem:[%s3245_s6 + $0x20] sm:$0xf]  ;;  %s1854_s13 = sshll.u32 %s406_s23, 4  ;;  %s1840_s25 = scalar_lea.sflag [#allocation5], %s2546_s14  ;;  %s3198_s13 = int_to_ptr.vmem [resolvable:$true] %s1854_s13 }
  0x47   : > { %435 = vperm.xlu0 %2112, %v426_v18   ;;  %731 = vperm.xlu1 %2113, %v725_v20   ;;  %v1357_v30 = vld [vmem:[%s3247_s8] sm:$0xff]  ;;  %v1358_v31 = vld [vmem:[%s3247_s8 + $0x8] sm:$0xff]  ;;  %v1359_v32 = vld [vmem:[%s3247_s8 + $0x10] sm:$0xff]  ;;  %s2308_s26 = scalar_lea.vmem %s3198_s13, 64  ;;  %p3260_p10 = scmp.ne.s32.totalorder %s3256_s29, 0 }
  0x48   : > { %v1360_v33 = vld [vmem:[%s3247_s8 + $0x18] sm:$0xff]  ;;  %v1361_v34 = vld [vmem:[%s3247_s8 + $0x20] sm:$0xff]  ;;  %p2309_p6 = scmp.ne.s32.totalorder %s3198_s13, %s2308_s26  ;;  %s2383_s10 = smov [#allocation6]  }
  0x49   : > { %532 = vmatpush1.bf16.msra.mxu0 %v516_v14  ;;  %583 = vmatpush1.bf16.msra.mxu1 %v522_v16  ;;  %v1697_v35 = vld [vmem:[#allocation2] sm:$0x1]  ;;  %s2312_s21 = sshll.u32 %s2383_s10, 4  ;;  %s2313_s21 = int_to_ptr.vmem [resolvable:$false] %s2312_s21 }
  0x4a   : > { %p2310_p11 = pnand %p2309_p6, %p3260_p10  ;;  %s2314_s27 = scalar_lea.vmem %s2313_s21, 128 }
  0x4b   : > { %736 = vperm.xlu0 %2112, %v726_v21   ;;  %741 = vperm.xlu1 %2113, %v727_v22   ;;  %p2315_p8 = scmp.lt.s32.totalorder %s3198_s13, %s2313_s21  ;;  %p2316_p9 = scmp.lt.s32.totalorder %s2314_s27, %s2308_s26 }
  0x4c   : > { %1946 = vmatmul.mubr.msk.bf16.vlgmr.msra.gmra.mrb[0].mxu0 %vm507_vm1, %v2132_v17  ;;  %1949 = vmatmul.mubr.msk.bf16.vlgmr.msra.gmra.mrb[0].mxu1 %vm507_vm1, %v2132_v17  ;;  %p2311_p12 = pneg %p2310_p11 }
  0x4d   : > { %569 = vmatprep.mubr.bf16.mxu0 %v2380_v1  ;;  %620 = vmatprep.mubr.bf16.mxu1 %v2380_v1  ;;  %p2317_p0 = por %p2316_p9, %p2315_p8 }
  0x4f   : > { %746 = vperm.xlu0 %2112, %v728_v24   ;;  %1017 = vperm.xlu1 %2113, %v1010_v25   ;;  %p2318_p2 = pnand %p2317_p0, %p2311_p12 }
  0x53   : > { %1022 = vperm.xlu0 %2112, %v1011_v26   ;;  %1027 = vperm.xlu1 %2113, %v1012_v27  }
  0x54   : > { %1947 = vmatmul.mubr.msk.bf16.gmra.mrb[4].mxu0 %vm507_vm1, %v2133_v23  ;;  %1950 = vmatmul.mubr.msk.bf16.gmra.mrb[4].mxu1 %vm507_vm1, %v2133_v23  ;;  %vm1063_vm1 = vcmask 1043456  }
  0x55   : > { %811 = vmatprep.mubr.bf16.mxu0 %v2380_v1  ;;  %864 = vmatprep.mubr.bf16.mxu1 %v2380_v1 }
  0x57   : > { %1032 = vperm.xlu0 %2112, %v1013_v28   ;;  %1037 = vperm.xlu1 %2113, %v1014_v29  }
  0x5b   : > { %1364 = vperm.xlu0 %2112, %v1357_v30   ;;  %1369 = vperm.xlu1 %2113, %v1358_v31  }
  0x5f   : > { %1374 = vperm.xlu0 %2112, %v1359_v32   ;;  %1379 = vperm.xlu1 %2113, %v1360_v33  }
  0x63   : > { %1384 = vperm.xlu0 %2112, %v1361_v34   ;;  %1700 = vperm.xlu1 %2113, %v1697_v35  }
  0xc2   : > { %v431_v36 = vpop.permute.xlu0 %430  ;;  %v441_v59 = vpop.permute.xlu1 %440 }
  0xc6   : > { %v436_v49 = vpop.permute.xlu0 %435 }
 0x11f   : > { %v561_v37 = vpop.f32.mrb[0].mxu0  ;;  %v612_v38 = vpop.f32.mrb[0].mxu1 }
 0x120   : > { %v2627_v39 = vadd.f32 %v561_v37, %v431_v36  ;;  %v2629_v40 = vadd.f32 %v612_v38, %v431_v36  ;;  %v563_v41 = vpop.f32.mrb[1].mxu0  ;;  %v614_v42 = vpop.f32.mrb[1].mxu1 }
 0x121   : > { %v2631_v43 = vadd.f32 %v563_v41, %v431_v36  ;;  %v2633_v44 = vadd.f32 %v614_v42, %v431_v36  ;;  %v565_v45 = vpop.f32.mrb[2].mxu0  ;;  %v616_v46 = vpop.f32.mrb[2].mxu1 }
 0x122   : > { %v641_v47 = vmul.f32 1.442695, %v2627_v39  ;;  %v645_v48 = vmul.f32 1.442695, %v2629_v40  ;;  %v2639_v52 = vadd.f32 %v565_v45, %v436_v49  ;;  %v2641_v53 = vadd.f32 %v616_v46, %v436_v49  ;;  %v567_v54 = vpop.f32.mrb[3].mxu0  ;;  %v618_v55 = vpop.f32.mrb[3].mxu1 }
 0x123   : > { %v643_v50 = vmul.f32 1.442695, %v2631_v43  ;;  %v647_v51 = vmul.f32 1.442695, %v2633_v44  ;;  %v2643_v56 = vadd.f32 %v567_v54, %v436_v49  ;;  %v2645_v57 = vadd.f32 %v618_v55, %v436_v49 }
 0x124   : > { %2142 = vpow2.f32 %v641_v47  ;;  %v649_v58 = vmul.f32 1.442695, %v2639_v52  ;;  %v653_v60 = vmul.f32 1.442695, %v2641_v53  ;;  %vm629_vm2 = vcmp.gt.f32.partialorder %v2627_v39, 0.0 }
 0x125   : > { %2144 = vpow2.f32 %v645_v48  ;;  %v651_v61 = vmul.f32 1.442695, %v2643_v56  ;;  %v655_v63 = vmul.f32 1.442695, %v2645_v57  ;;  %vm631_vm3 = vcmp.gt.f32.partialorder %v2629_v40, 0.0 }
 0x126   : > { %2146 = vpow2.f32 %v643_v50  ;;  %vm630_vm4 = vcmp.gt.f32.partialorder %v2631_v43, 0.0  ;;  %vm632_vm5 = vcmp.gt.f32.partialorder %v2633_v44, 0.0  ;;  %vm633_vm6 = vcmp.gt.f32.partialorder %v2639_v52, 0.0 }
 0x127   : > { %2148 = vpow2.f32 %v647_v51  ;;  %v571_v62 = vpop.f32.mrb[4].mxu0  ;;  %v622_v2 = vpop.f32.mrb[4].mxu1  ;;  %vm635_vm7 = vcmp.gt.f32.partialorder %v2641_v53, 0.0  ;;  %vm634_vm8 = vcmp.gt.f32.partialorder %v2643_v56, 0.0  ;;  %vm636_vm9 = vcmp.gt.f32.partialorder %v2645_v57, 0.0 }
 0x128   : > { %2150 = vpow2.f32 %v649_v58  ;;  %v2651_v0 = vadd.f32 %v571_v62, %v441_v59  ;;  %v573_v3 = vpop.f32.mrb[5].mxu0  ;;  %v2653_v4 = vadd.f32 %v622_v2, %v441_v59  ;;  %v624_v6 = vpop.f32.mrb[5].mxu1 }
 0x129   : > { %2152 = vpow2.f32 %v653_v60  ;;  %v2655_v5 = vadd.f32 %v573_v3, %v441_v59  ;;  %v575_v7 = vpop.f32.mrb[6].mxu0  ;;  %v2658_v9 = vadd.f32 %v624_v6, %v441_v59  ;;  %v626_v10 = vpop.f32.mrb[6].mxu1 }
 0x12a   : > { %2154 = vpow2.f32 %v651_v61  ;;  %v657_v8 = vmul.f32 1.442695, %v2651_v0  ;;  %v576_v11 = vpop.f32.mrb[7].mxu0  ;;  %v661_v12 = vmul.f32 1.442695, %v2653_v4  ;;  %v627_v13 = vpop.f32.mrb[7].mxu1 }
 0x12b   : > { %2156 = vpow2.f32 %v655_v63  ;;  %v659_v14 = vmul.f32 1.442695, %v2655_v5  ;;  %v663_v15 = vmul.f32 1.442695, %v2658_v9  ;;  %vm637_vm10 = vcmp.gt.f32.partialorder %v2651_v0, 0.0 }
 0x12c   : > { %2158 = vpow2.f32 %v657_v8  ;;  %vm639_vm11 = vcmp.gt.f32.partialorder %v2653_v4, 0.0  ;;  %vm638_vm12 = vcmp.gt.f32.partialorder %v2655_v5, 0.0  ;;  %vm640_vm14 = vcmp.gt.f32.partialorder %v2658_v9, 0.0 }
 0x12d   : > { %2160 = vpow2.f32 %v661_v12 }
 0x12e   : > { %v2143_v16 = vpop.eup %2142  ;;  %2162 = vpow2.f32 %v659_v14 }
 0x12f   : > { %v2145_v17 = vpop.eup %2144  ;;  %v1951_v18 = vadd.f32 -1.0, %v2143_v16  ;;  %2164 = vpow2.f32 %v663_v15 }
 0x130   : > { %v2147_v19 = vpop.eup %2146  ;;  %v1953_v20 = vadd.f32 -1.0, %v2145_v17 }
 0x131   : > { %v2149_v21 = vpop.eup %2148  ;;  %v677_v22 = vmul.f32 1.6732632, %v1951_v18  ;;  %v1952_v23 = vadd.f32 -1.0, %v2147_v19 }
 0x132   : > { %v2151_v24 = vpop.eup %2150  ;;  %v679_v25 = vmul.f32 1.6732632, %v1953_v20  ;;  %v1954_v26 = vadd.f32 -1.0, %v2149_v21 }
 0x133   : > { %v2153_v27 = vpop.eup %2152  ;;  %v689_v28 = vsel %vm629_vm2, %v2627_v39, %v677_v22  ;;  %v678_v29 = vmul.f32 1.6732632, %v1952_v23  ;;  %v1955_v30 = vadd.f32 -1.0, %v2151_v24 }
 0x134   : > { %v2155_v31 = vpop.eup %2154  ;;  %v701_v32 = vmul.f32 1.050701, %v689_v28  ;;  %v691_v33 = vsel %vm631_vm3, %v2629_v40, %v679_v25  ;;  %v680_v34 = vmul.f32 1.6732632, %v1954_v26  ;;  %v1957_v35 = vadd.f32 -1.0, %v2153_v27  ;;  %v732_v25 = vpop.permute.xlu1 %731 }
 0x135   : > { %v2157_v36 = vpop.eup %2156  ;;  %v703_v37 = vmul.f32 1.050701, %v691_v33  ;;  %v690_v38 = vsel %vm630_vm4, %v2631_v43, %v678_v29  ;;  %v681_v39 = vmul.f32 1.6732632, %v1955_v30  ;;  %v1956_v41 = vadd.f32 -1.0, %v2155_v31  ;;  %v737_v29 = vpop.permute.xlu0 %736 }
 0x136   : > { %v2159_v42 = vpop.eup %2158  ;;  %v702_v45 = vmul.f32 1.050701, %v690_v38  ;;  %v692_v46 = vsel %vm632_vm5, %v2633_v44, %v680_v34  ;;  %v683_v47 = vmul.f32 1.6732632, %v1957_v35  ;;  %v1958_v40 = vadd.f32 -1.0, %v2157_v36 }
 0x137   : > { %v2161_v48 = vpop.eup %2160  ;;  %v704_v49 = vmul.f32 1.050701, %v692_v46  ;;  %v693_v50 = vsel %vm633_vm6, %v2639_v52, %v681_v39  ;;  %v682_v51 = vmul.f32 1.6732632, %v1956_v41  ;;  %v1959_v54 = vadd.f32 -1.0, %v2159_v42 }
 0x138   : > { %v2163_v55 = vpop.eup %2162  ;;  %v705_v43 = vmul.f32 1.050701, %v693_v50  ;;  %v695_v58 = vsel %vm635_vm7, %v2641_v53, %v683_v47  ;;  %v684_v59 = vmul.f32 1.6732632, %v1958_v40  ;;  %v1961_v60 = vadd.f32 -1.0, %v2161_v48 }
 0x139   : > { %v2165_v61 = vpop.eup %2164  ;;  %v707_v44 = vmul.f32 1.050701, %v695_v58  ;;  %v694_v62 = vsel %vm634_vm8, %v2643_v56, %v682_v51  ;;  %v685_v63 = vmul.f32 1.6732632, %v1959_v54  ;;  %v1960_v2 = vadd.f32 -1.0, %v2163_v55 }
 0x13a   : > { %v713_v3 = vpack.c.bf16 %v705_v43, %v701_v32  ;;  %v706_v52 = vmul.f32 1.050701, %v694_v62  ;;  %v696_v6 = vsel %vm636_vm9, %v2645_v57, %v684_v59  ;;  %v687_v7 = vmul.f32 1.6732632, %v1961_v60 }
 0x13b   : > { %v715_v8 = vpack.c.bf16 %v707_v44, %v703_v37  ;;  %v708_v10 = vmul.f32 1.050701, %v696_v6  ;;  %v697_v53 = vsel %vm637_vm10, %v2651_v0, %v685_v63  ;;  %v686_v11 = vmul.f32 1.6732632, %v1960_v2  ;;  %v2751_v63 = vpop.permute.xlu0 %746 }
 0x13c   : > { %v709_v12 = vmul.f32 1.050701, %v697_v53  ;;  %v699_v56 = vsel %vm639_vm11, %v2653_v4, %v687_v7  ;;  %v1962_v13 = vadd.f32 -1.0, %v2165_v61  ;;  %v714_v14 = vpack.c.bf16 %v706_v52, %v702_v45 }
 0x13d   : > { %v711_v15 = vmul.f32 1.050701, %v699_v56  ;;  %v698_v57 = vsel %vm638_vm12, %v2655_v5, %v686_v11  ;;  %v716_v16 = vpack.c.bf16 %v708_v10, %v704_v49  ;;  %v2134_v5 = vld [vmem:[%s3242_s3] sm:$0xff]   ;;  %v742_v49 = vpop.permute.xlu1 %741 }
 0x13e   : > { %v710_v17 = vmul.f32 1.050701, %v698_v57  ;;  %v688_v18 = vmul.f32 1.6732632, %v1962_v13  ;;  %779 = vmatprep.subr.bf16.mxu0 %v714_v14  ;;  %v717_v19 = vpack.c.bf16 %v709_v12, %v709_v12  ;;  %v2381_v14 = vmov 65535  }
 0x13f   : > { %832 = vmatprep.subr.bf16.mxu1 %v716_v16  ;;  %780 = vmatpush1.bf16.msra.mxu0 %v713_v3  ;;  %v719_v0 = vpack.c.bf16 %v711_v15, %v711_v15  ;;  %v2772_v15 = vsel %vm1063_vm1, 4294967295, %v2381_v14 }
 0x140   : > { %v718_v20 = vpack.c.bf16 %v710_v17, %v710_v17  ;;  %v700_v4 = vsel %vm640_vm14, %v2658_v9, %v688_v18  ;;  %833 = vmatpush1.bf16.msra.mxu1 %v715_v8  ;;  %v768_v21 = vsel %vm766_vm13, %v717_v19, 0  ;;  %v2135_v9 = vld [vmem:[%s3242_s3 + $0x8] sm:$0x1f]  }
 0x141   : > { %v712_v22 = vmul.f32 1.050701, %v700_v4  ;;  %v774_v24 = vsel %vm766_vm13, %v719_v0, 0 }
 0x142   : > { %1965 = vmatprep.subr.msk.bf16.mxu0 %vm766_vm13, %v718_v20 }
 0x143   : > { %v720_v23 = vpack.c.bf16 %v712_v22, %v712_v22  ;;  %782 = vmatpush1.bf16.msra.mxu0 %v768_v21 }
 0x145   : > { %1968 = vmatprep.subr.msk.bf16.mxu1 %vm766_vm13, %v720_v23 }
 0x146   : > { %835 = vmatpush1.bf16.msra.mxu1 %v774_v24  ;;  %1966 = vmatmul.mubr.msk.bf16.vlgmr.msra.gmra.mrb[8].mxu0 %vm759_vm15, %v2134_v5 }
 0x147   : > { %821 = vmatprep.mubr.bf16.mxu0 %v2380_v1 }
 0x149   : > { %1969 = vmatmul.mubr.msk.bf16.vlgmr.msra.gmra.mrb[8].mxu1 %vm759_vm15, %v2134_v5 }
 0x14a   : > { %874 = vmatprep.mubr.bf16.mxu1 %v2380_v1 }
 0x14e   : > { %1967 = vmatmul.mubr.msk.bf16.gmra.mrb[12].mxu0 %vm759_vm15, %v2135_v9 }
 0x14f   : > { %1110 = vmatprep.mubr.bf16.mxu0 %v2380_v1 }
 0x151   : > { %1970 = vmatmul.mubr.msk.bf16.gmra.mrb[12].mxu1 %vm759_vm15, %v2135_v9 }
 0x152   : > { %1171 = vmatprep.mubr.bf16.mxu1 %v2380_v1 }
 0x219   : > { %v813_v26 = vpop.f32.mrb[8].mxu0 }
 0x21a   : > { %v2723_v27 = vadd.f32 %v813_v26, %v732_v25  ;;  %v815_v28 = vpop.f32.mrb[9].mxu0 }
 0x21b   : > { %v2725_v30 = vadd.f32 %v815_v28, %v732_v25  ;;  %v817_v31 = vpop.f32.mrb[10].mxu0 }
 0x21c   : > { %v901_v32 = vmul.f32 1.442695, %v2723_v27  ;;  %v866_v33 = vpop.f32.mrb[8].mxu1  ;;  %v2728_v34 = vadd.f32 %v817_v31, %v737_v29  ;;  %v819_v35 = vpop.f32.mrb[11].mxu0  ;;  %vm885_vm2 = vcmp.gt.f32.partialorder %v2723_v27, 0.0 }
 0x21d   : > { %v2730_v36 = vadd.f32 %v866_v33, %v732_v25  ;;  %v903_v37 = vmul.f32 1.442695, %v2725_v30  ;;  %v868_v38 = vpop.f32.mrb[9].mxu1  ;;  %v2733_v39 = vadd.f32 %v819_v35, %v737_v29  ;;  %vm886_vm5 = vcmp.gt.f32.partialorder %v2725_v30, 0.0 }
 0x21e   : > { %2166 = vpow2.f32 %v901_v32  ;;  %v2735_v41 = vadd.f32 %v868_v38, %v732_v25  ;;  %v909_v42 = vmul.f32 1.442695, %v2728_v34  ;;  %v870_v45 = vpop.f32.mrb[10].mxu1  ;;  %vm889_vm4 = vcmp.gt.f32.partialorder %v2728_v34, 0.0 }
 0x21f   : > { %v905_v46 = vmul.f32 1.442695, %v2730_v36  ;;  %2168 = vpow2.f32 %v903_v37  ;;  %v2739_v47 = vadd.f32 %v870_v45, %v737_v29  ;;  %v872_v40 = vpop.f32.mrb[11].mxu1  ;;  %v911_v51 = vmul.f32 1.442695, %v2733_v39 }
 0x220   : > { %v907_v48 = vmul.f32 1.442695, %v2735_v41  ;;  %2170 = vpow2.f32 %v909_v42  ;;  %v2744_v55 = vadd.f32 %v872_v40, %v737_v29  ;;  %vm887_vm3 = vcmp.gt.f32.partialorder %v2730_v36, 0.0 }
 0x221   : > { %2172 = vpow2.f32 %v905_v46  ;;  %v913_v50 = vmul.f32 1.442695, %v2739_v47  ;;  %v823_v54 = vpop.f32.mrb[12].mxu0  ;;  %vm888_vm6 = vcmp.gt.f32.partialorder %v2735_v41, 0.0  ;;  %vm890_vm7 = vcmp.gt.f32.partialorder %v2733_v39, 0.0 }
 0x222   : > { %2174 = vpow2.f32 %v907_v48  ;;  %v2746_v43 = vadd.f32 %v823_v54, %v742_v49  ;;  %v825_v58 = vpop.f32.mrb[13].mxu0  ;;  %v915_v61 = vmul.f32 1.442695, %v2744_v55  ;;  %vm891_vm8 = vcmp.gt.f32.partialorder %v2739_v47, 0.0 }
 0x223   : > { %2176 = vpow2.f32 %v913_v50  ;;  %v2748_v59 = vadd.f32 %v825_v58, %v742_v49  ;;  %v827_v60 = vpop.f32.mrb[14].mxu0  ;;  %vm892_vm9 = vcmp.gt.f32.partialorder %v2744_v55, 0.0 }
 0x224   : > { %2178 = vpow2.f32 %v911_v51  ;;  %v876_v44 = vpop.f32.mrb[12].mxu1  ;;  %v829_v62 = vpop.f32.mrb[15].mxu0  ;;  %v917_v2 = vmul.f32 1.442695, %v2746_v43  ;;  %v2758_v7 = vadd.f32 %v827_v60, %v2751_v63  ;;  %vm893_vm10 = vcmp.gt.f32.partialorder %v2746_v43, 0.0 }
 0x225   : > { %v2754_v3 = vadd.f32 %v876_v44, %v742_v49  ;;  %v919_v52 = vmul.f32 1.442695, %v2748_v59  ;;  %v878_v6 = vpop.f32.mrb[13].mxu1  ;;  %2180 = vpow2.f32 %v915_v61  ;;  %v2765_v11 = vadd.f32 %v829_v62, %v2751_v63 }
 0x226   : > { %v880_v8 = vpop.f32.mrb[14].mxu1  ;;  %2182 = vpow2.f32 %v917_v2  ;;  %v2769_v13 = vadd.f32 %v878_v6, %v742_v49  ;;  %v925_v17 = vmul.f32 1.442695, %v2758_v7  ;;  %vm894_vm12 = vcmp.gt.f32.partialorder %v2748_v59, 0.0 }
 0x227   : > { %v921_v10 = vmul.f32 1.442695, %v2754_v3  ;;  %v2762_v53 = vadd.f32 %v880_v8, %v2751_v63  ;;  %v2767_v12 = vpop.f32.mrb[15].mxu1  ;;  %2184 = vpow2.f32 %v919_v52  ;;  %v927_v22 = vmul.f32 1.442695, %v2765_v11 }
 0x228   : > { %v2167_v56 = vpop.eup %2166  ;;  %v923_v24 = vmul.f32 1.442695, %v2769_v13  ;;  %vm895_vm11 = vcmp.gt.f32.partialorder %v2754_v3, 0.0  ;;  %vm897_vm14 = vcmp.gt.f32.partialorder %v2758_v7, 0.0 }
 0x229   : > { %v2169_v57 = vpop.eup %2168  ;;  %v1971_v16 = vadd.f32 -1.0, %v2167_v56  ;;  %2186 = vpow2.f32 %v921_v10  ;;  %v929_v0 = vmul.f32 1.442695, %v2762_v53  ;;  %v2816_v10 = vadd.f32 %v2767_v12, %v2751_v63 }
 0x22a   : > { %v2171_v18 = vpop.eup %2170  ;;  %v1972_v19 = vadd.f32 -1.0, %v2169_v57  ;;  %2188 = vpow2.f32 %v925_v17  ;;  %vm899_vm15 = vcmp.gt.f32.partialorder %v2762_v53, 0.0 }
 0x22b   : > { %v2173_v20 = vpop.eup %2172  ;;  %v949_v4 = vmul.f32 1.6732632, %v1971_v16  ;;  %v1975_v21 = vadd.f32 -1.0, %v2171_v18  ;;  %2190 = vpow2.f32 %v929_v0 }
 0x22c   : > { %v2175_v5 = vpop.eup %2174  ;;  %v1973_v23 = vadd.f32 -1.0, %v2173_v20  ;;  %2192 = vpow2.f32 %v927_v22  ;;  %v950_v33 = vmul.f32 1.6732632, %v1972_v19 }
 0x22d   : > { %v2177_v9 = vpop.eup %2176  ;;  %v965_v25 = vsel %vm885_vm2, %v2723_v27, %v949_v4  ;;  %v1974_v26 = vadd.f32 -1.0, %v2175_v5  ;;  %v953_v28 = vmul.f32 1.6732632, %v1975_v21  ;;  %2194 = vpow2.f32 %v923_v24 }
 0x22e   : > { %v2179_v29 = vpop.eup %2178  ;;  %v951_v31 = vmul.f32 1.6732632, %v1973_v23  ;;  %v1977_v32 = vadd.f32 -1.0, %v2177_v9  ;;  %v2793_v27 = vmul.f32 1.050701, %v965_v25  ;;  %v966_v52 = vsel %vm886_vm5, %v2725_v30, %v950_v33 }
 0x22f   : > { %v969_v35 = vsel %vm889_vm4, %v2728_v34, %v953_v28  ;;  %v1976_v37 = vadd.f32 -1.0, %v2179_v29  ;;  %v2181_v38 = vpop.eup %2180  ;;  %v952_v48 = vmul.f32 1.6732632, %v1974_v26  ;;  %v982_v19 = vmul.f32 1.050701, %v966_v52  ;;  %v2872_v52 = vpop.permute.xlu0 %1022 }
 0x230   : > { %v967_v42 = vsel %vm887_vm3, %v2730_v36, %v951_v31  ;;  %v2798_v45 = vmul.f32 1.050701, %v969_v35  ;;  %v955_v46 = vmul.f32 1.6732632, %v1977_v32  ;;  %v2183_v40 = vpop.eup %2182  ;;  %v1978_v50 = vadd.f32 -1.0, %v2181_v38 }
 0x231   : > { %v954_v49 = vmul.f32 1.6732632, %v1976_v37  ;;  %v2185_v34 = vpop.eup %2184  ;;  %v983_v51 = vmul.f32 1.050701, %v967_v42  ;;  %v1979_v58 = vadd.f32 -1.0, %v2183_v40  ;;  %v968_v56 = vsel %vm888_vm6, %v2735_v41, %v952_v48 }
 0x232   : > { %v997_v54 = vpack.c.bf16 %v2798_v45, %v2793_v27  ;;  %v971_v36 = vsel %vm891_vm8, %v2739_v47, %v955_v46  ;;  %v956_v62 = vmul.f32 1.6732632, %v1978_v50  ;;  %v1980_v2 = vadd.f32 -1.0, %v2185_v34 }
 0x233   : > { %v2187_v60 = vpop.eup %2186  ;;  %v987_v61 = vmul.f32 1.050701, %v971_v36  ;;  %v970_v44 = vsel %vm890_vm7, %v2733_v39, %v954_v49  ;;  %v957_v6 = vmul.f32 1.6732632, %v1979_v58  ;;  %v984_v20 = vmul.f32 1.050701, %v968_v56 }
 0x234   : > { %v1981_v8 = vadd.f32 -1.0, %v2187_v60  ;;  %v2189_v47 = vpop.eup %2188  ;;  %v986_v57 = vmul.f32 1.050701, %v970_v44  ;;  %v972_v39 = vsel %vm892_vm9, %v2744_v55, %v956_v62  ;;  %v958_v18 = vmul.f32 1.6732632, %v1980_v2 }
 0x235   : > { %v999_v14 = vpack.c.bf16 %v987_v61, %v983_v51  ;;  %v2191_v16 = vpop.eup %2190  ;;  %v973_v30 = vsel %vm893_vm10, %v2746_v43, %v957_v6  ;;  %v1983_v63 = vadd.f32 -1.0, %v2189_v47  ;;  %v988_v0 = vmul.f32 1.050701, %v972_v39  ;;  %v1018_v61 = vpop.permute.xlu1 %1017 }
 0x236   : > { %v959_v17 = vmul.f32 1.6732632, %v1981_v8  ;;  %v2193_v12 = vpop.eup %2192  ;;  %v1985_v41 = vadd.f32 -1.0, %v2191_v16  ;;  %vm898_vm2 = vcmp.gt.f32.partialorder %v2765_v11, 0.0  ;;  %v989_v55 = vmul.f32 1.050701, %v973_v30 }
 0x237   : > { %v961_v4 = vmul.f32 1.6732632, %v1983_v63  ;;  %v1984_v21 = vadd.f32 -1.0, %v2193_v12  ;;  %v931_v5 = vmul.f32 1.442695, %v2816_v10  ;;  %v974_v23 = vsel %vm894_vm12, %v2748_v59, %v958_v18  ;;  %v2195_v26 = vpop.eup %2194  ;;  %v2890_v12 = vpop.permute.xlu0 %1032 }
 0x238   : > { %v975_v22 = vsel %vm895_vm11, %v2754_v3, %v959_v17  ;;  %v963_v43 = vmul.f32 1.6732632, %v1985_v41  ;;  %v998_v25 = vpack.c.bf16 %v986_v57, %v982_v19  ;;  %v1000_v3 = vpack.c.bf16 %v988_v0, %v984_v20 }
 0x239   : > { %v977_v24 = vsel %vm897_vm14, %v2758_v7, %v961_v4  ;;  %v962_v9 = vmul.f32 1.6732632, %v1984_v21  ;;  %2196 = vpow2.f32 %v931_v5  ;;  %v991_v31 = vmul.f32 1.050701, %v975_v22  ;;  %v2885_v30 = vpop.permute.xlu1 %1027 }
 0x23a   : > { %v993_v28 = vmul.f32 1.050701, %v977_v24  ;;  %v979_v29 = vsel %vm899_vm15, %v2762_v53, %v963_v43  ;;  %1078 = vmatprep.subr.bf16.mxu0 %v998_v25  ;;  %v990_v33 = vmul.f32 1.050701, %v974_v23  ;;  %1139 = vmatprep.subr.bf16.mxu1 %v1000_v3  ;;  %v1065_v38 = vsel %vm514_vm0, %v2772_v15, 0 }
 0x23b   : > { %v995_v32 = vmul.f32 1.050701, %v979_v29  ;;  %v978_v59 = vsel %vm898_vm2, %v2765_v11, %v962_v9  ;;  %1079 = vmatpush1.bf16.msra.mxu0 %v997_v54  ;;  %1140 = vmatpush1.bf16.msra.mxu1 %v999_v14  ;;  %v1982_v27 = vadd.f32 -1.0, %v2195_v26  ;;  %v2136_v11 = vld [vmem:[%s3244_s5] sm:$0xff]   ;;  %vm1053_vm3 = vcmask 203776   ;;  %v2137_v54 = vld [vmem:[%s3244_s5 + $0x8] sm:$0xff]  }
 0x23c   : > { %v1001_v35 = vpack.c.bf16 %v993_v28, %v989_v55  ;;  %v994_v7 = vmul.f32 1.050701, %v978_v59  ;;  %vm896_vm4 = vcmp.gt.f32.partialorder %v2769_v13, 0.0  ;;  %vm900_vm0 = vcmp.gt.f32.partialorder %v2816_v10, 0.0 }
 0x23d   : > { %v1003_v37 = vpack.c.bf16 %v995_v32, %v991_v31  ;;  %v960_v46 = vmul.f32 1.6732632, %v1982_v27 }
 0x23e   : > { %v1002_v53 = vpack.c.bf16 %v994_v7, %v990_v33  ;;  %v1067_v45 = vand.u32 %v1065_v38, %v1001_v35 }
 0x23f   : > { %v976_v15 = vsel %vm896_vm4, %v2769_v13, %v960_v46  ;;  %v1073_v60 = vand.u32 %v1065_v38, %v1003_v37  ;;  %v2138_v13 = vld [vmem:[%s3244_s5 + $0x10] ss:$0 sps:$4 sm:$0x33]  }
 0x240   : > { %v1070_v42 = vand.u32 %v1065_v38, %v1002_v53  ;;  %v992_v34 = vmul.f32 1.050701, %v976_v15 }
 0x242   : > { %1080 = vmatprep.subr.bf16.mxu0 %v1070_v42 }
 0x243   : > { %1081 = vmatpush1.bf16.msra.mxu0 %v1067_v45  ;;  %v2197_v40 = vpop.eup %2196 }
 0x244   : > { %v1986_v48 = vadd.f32 -1.0, %v2197_v40 }
 0x246   : > { %1990 = vmatmul.mubr.msk.bf16.vlgmr.msra.gmra.mrb[16].mxu0 %vm1053_vm3, %v2136_v11  ;;  %v964_v49 = vmul.f32 1.6732632, %v1986_v48 }
 0x247   : > { %1120 = vmatprep.mubr.bf16.mxu0 %v2380_v1 }
 0x248   : > { %v980_v50 = vsel %vm900_vm0, %v2816_v10, %v964_v49 }
 0x249   : > { %v996_v51 = vmul.f32 1.050701, %v980_v50 }
 0x24b   : > { %v1004_v36 = vpack.c.bf16 %v996_v51, %v992_v34 }
 0x24d   : > { %v1076_v58 = vand.u32 %v1065_v38, %v1004_v36 }
 0x24e   : > { %1991 = vmatmul.mubr.msk.bf16.gmra.mrb[20].mxu0 %vm1053_vm3, %v2137_v54 }
 0x24f   : > { %1130 = vmatprep.mubr.bf16.mxu0 %v2380_v1  ;;  %1141 = vmatprep.subr.bf16.mxu1 %v1076_v58 }
 0x250   : > { %1142 = vmatpush1.bf16.msra.mxu1 %v1073_v60 }
 0x253   : > { %1993 = vmatmul.mubr.msk.bf16.vlgmr.msra.gmra.mrb[16].mxu1 %vm1053_vm3, %v2136_v11 }
 0x254   : > { %1181 = vmatprep.mubr.bf16.mxu1 %v2380_v1 }
 0x256   : > { %1992 = vmatmul.mubr.msk.bf16.gmra.mrb[24].mxu0 %vm1053_vm3, %v2138_v13 }
 0x257   : > { %1454 = vmatprep.mubr.bf16.mxu0 %v2380_v1 }
 0x25b   : > { %1994 = vmatmul.mubr.msk.bf16.gmra.mrb[20].mxu1 %vm1053_vm3, %v2137_v54 }
 0x25c   : > { %1191 = vmatprep.mubr.bf16.mxu1 %v2380_v1 }
 0x263   : > { %1995 = vmatmul.mubr.msk.bf16.gmra.mrb[24].mxu1 %vm1053_vm3, %v2138_v13 }
 0x264   : > { %1515 = vmatprep.mubr.bf16.mxu1 %v2380_v1 }
 0x319   : > { %v1112_v44 = vpop.f32.mrb[16].mxu0 }
 0x31a   : > { %v1113_v62 = vadd.f32 %v1112_v44, %v1018_v61  ;;  %v1114_v2 = vpop.f32.mrb[17].mxu0 }
 0x31b   : > { %v2874_v6 = vadd.f32 %v1114_v2, %v1018_v61  ;;  %v1116_v8 = vpop.f32.mrb[18].mxu0 }
 0x31c   : > { %v1220_v10 = vmul.f32 1.442695, %v1113_v62  ;;  %v2877_v47 = vadd.f32 %v1116_v8, %v2872_v52  ;;  %v1118_v56 = vpop.f32.mrb[19].mxu0  ;;  %vm1200_vm5 = vcmp.gt.f32.partialorder %v1113_v62, 0.0 }
 0x31d   : > { %v1222_v14 = vmul.f32 1.442695, %v2874_v6  ;;  %v2881_v57 = vadd.f32 %v1118_v56, %v2872_v52  ;;  %vm1201_vm7 = vcmp.gt.f32.partialorder %v2874_v6, 0.0 }
 0x31e   : > { %2198 = vpow2.f32 %v1220_v10  ;;  %v1228_v39 = vmul.f32 1.442695, %v2877_v47  ;;  %vm1204_vm6 = vcmp.gt.f32.partialorder %v2877_v47, 0.0 }
 0x31f   : > { %2200 = vpow2.f32 %v1222_v14  ;;  %v1230_v16 = vmul.f32 1.442695, %v2881_v57  ;;  %vm1205_vm8 = vcmp.gt.f32.partialorder %v2881_v57, 0.0 }
 0x320   : > { %2202 = vpow2.f32 %v1228_v39 }
 0x321   : > { %2204 = vpow2.f32 %v1230_v16  ;;  %v1122_v17 = vpop.f32.mrb[20].mxu0 }
 0x322   : > { %v2888_v18 = vadd.f32 %v1122_v17, %v2885_v30  ;;  %v1124_v63 = vpop.f32.mrb[21].mxu0  ;;  %v1038_v17 = vpop.permute.xlu1 %1037 }
 0x323   : > { %v2893_v19 = vadd.f32 %v1124_v63, %v2885_v30  ;;  %v1126_v0 = vpop.f32.mrb[22].mxu0 }
 0x324   : > { %v1236_v41 = vmul.f32 1.442695, %v2888_v18  ;;  %v2897_v20 = vadd.f32 %v1126_v0, %v2890_v12  ;;  %v1128_v4 = vpop.f32.mrb[23].mxu0  ;;  %vm1208_vm9 = vcmp.gt.f32.partialorder %v2888_v18, 0.0 }
 0x325   : > { %v1238_v21 = vmul.f32 1.442695, %v2893_v19  ;;  %v2901_v55 = vadd.f32 %v1128_v4, %v2890_v12  ;;  %vm1209_vm10 = vcmp.gt.f32.partialorder %v2893_v19, 0.0 }
 0x326   : > { %2206 = vpow2.f32 %v1236_v41  ;;  %v1244_v22 = vmul.f32 1.442695, %v2897_v20  ;;  %v1173_v43 = vpop.f32.mrb[16].mxu1  ;;  %vm1212_vm11 = vcmp.gt.f32.partialorder %v2897_v20, 0.0 }
 0x327   : > { %2208 = vpow2.f32 %v1238_v21  ;;  %v1246_v5 = vmul.f32 1.442695, %v2901_v55  ;;  %v2905_v24 = vadd.f32 %v1173_v43, %v1018_v61  ;;  %v1175_v9 = vpop.f32.mrb[17].mxu1  ;;  %vm1213_vm12 = vcmp.gt.f32.partialorder %v2901_v55, 0.0 }
 0x328   : > { %v2199_v23 = vpop.eup %2198  ;;  %2210 = vpow2.f32 %v1244_v22  ;;  %v2907_v28 = vadd.f32 %v1175_v9, %v1018_v61  ;;  %v1177_v29 = vpop.f32.mrb[18].mxu1 }
 0x329   : > { %v2201_v25 = vpop.eup %2200  ;;  %v1996_v26 = vadd.f32 -1.0, %v2199_v23  ;;  %2212 = vpow2.f32 %v1246_v5  ;;  %v2909_v3 = vpop.f32.mrb[24].mxu0  ;;  %v1224_v32 = vmul.f32 1.442695, %v2905_v24  ;;  %v2913_v59 = vadd.f32 %v1177_v29, %v2872_v52 }
 0x32a   : > { %v2203_v31 = vpop.eup %2202  ;;  %v1179_v33 = vpop.f32.mrb[19].mxu1  ;;  %v1226_v38 = vmul.f32 1.442695, %v2907_v28  ;;  %v1997_v48 = vadd.f32 -1.0, %v2201_v25  ;;  %vm1202_vm14 = vcmp.gt.f32.partialorder %v2905_v24, 0.0  ;;  %vm1203_vm2 = vcmp.gt.f32.partialorder %v2907_v28, 0.0 }
 0x32b   : > { %v2915_v35 = vpop.f32.mrb[25].mxu0  ;;  %v2205_v7 = vpop.eup %2204  ;;  %v1280_v37 = vmul.f32 1.6732632, %v1996_v26  ;;  %v2000_v53 = vadd.f32 -1.0, %v2203_v31  ;;  %2214 = vpow2.f32 %v1224_v32  ;;  %v1232_v27 = vmul.f32 1.442695, %v2913_v59 }
 0x32c   : > { %v1136_v42 = vpop.f32.mrb[26].mxu0  ;;  %2216 = vpow2.f32 %v1226_v38  ;;  %v2001_v46 = vadd.f32 -1.0, %v2205_v7  ;;  %v2923_v15 = vadd.f32 %v1179_v33, %v2872_v52  ;;  %v1281_v8 = vmul.f32 1.6732632, %v1997_v48 }
 0x32d   : > { %v1300_v45 = vsel %vm1200_vm5, %v1113_v62, %v1280_v37  ;;  %v1284_v11 = vmul.f32 1.6732632, %v2000_v53  ;;  %v1137_v40 = vpop.f32.mrb[27].mxu0  ;;  %2218 = vpow2.f32 %v1232_v27  ;;  %vm1206_vm15 = vcmp.gt.f32.partialorder %v2913_v59, 0.0 }
 0x32e   : > { %v2925_v49 = vmul.f32 1.050701, %v1300_v45  ;;  %v1285_v34 = vmul.f32 1.6732632, %v2001_v46  ;;  %v1183_v51 = vpop.f32.mrb[20].mxu1  ;;  %v2958_v22 = vadd.f32 %v2909_v3, %v1038_v17  ;;  %v1301_v29 = vsel %vm1201_vm7, %v2874_v6, %v1281_v8 }
 0x32f   : > { %v1304_v50 = vsel %vm1204_vm6, %v2877_v47, %v1284_v11  ;;  %v1234_v58 = vmul.f32 1.442695, %v2923_v15  ;;  %v2933_v60 = vadd.f32 %v1183_v51, %v2885_v30  ;;  %v1185_v13 = vpop.f32.mrb[21].mxu1  ;;  %v2991_v8 = vadd.f32 %v2915_v35, %v1038_v17 }
 0x330   : > { %v2207_v54 = vpop.eup %2206  ;;  %v2929_v36 = vmul.f32 1.050701, %v1304_v50  ;;  %v2937_v62 = vadd.f32 %v1185_v13, %v2885_v30  ;;  %v1187_v2 = vpop.f32.mrb[22].mxu1  ;;  %v1305_v14 = vsel %vm1205_vm8, %v2881_v57, %v1285_v34  ;;  %v1252_v40 = vmul.f32 1.442695, %v2958_v22 }
 0x331   : > { %v2209_v61 = vpop.eup %2208  ;;  %v2004_v44 = vadd.f32 -1.0, %v2207_v54  ;;  %2220 = vpow2.f32 %v1234_v58  ;;  %v1189_v47 = vpop.f32.mrb[23].mxu1  ;;  %v1240_v16 = vmul.f32 1.442695, %v2933_v60  ;;  %v2951_v41 = vadd.f32 %v1187_v2, %v2890_v12 }
 0x332   : > { %v2211_v52 = vpop.eup %2210  ;;  %v1340_v10 = vpack.c.bf16 %v2929_v36, %v2925_v49  ;;  %v2005_v30 = vadd.f32 -1.0, %v2209_v61  ;;  %v1242_v63 = vmul.f32 1.442695, %v2937_v62  ;;  %v1325_v5 = vmul.f32 1.050701, %v1305_v14 }
 0x333   : > { %v2213_v56 = vpop.eup %2212  ;;  %v1288_v39 = vmul.f32 1.6732632, %v2004_v44  ;;  %v2008_v0 = vadd.f32 -1.0, %v2211_v52  ;;  %2222 = vpow2.f32 %v1240_v16  ;;  %v2961_v9 = vadd.f32 %v1189_v47, %v2890_v12 }
 0x334   : > { %v2009_v4 = vadd.f32 -1.0, %v2213_v56  ;;  %v1289_v21 = vmul.f32 1.6732632, %v2005_v30  ;;  %2224 = vpow2.f32 %v1242_v63  ;;  %v1321_v54 = vmul.f32 1.050701, %v1301_v29 }
 0x335   : > { %v1308_v57 = vsel %vm1208_vm9, %v2888_v18, %v1288_v39  ;;  %v2215_v43 = vpop.eup %2214  ;;  %v1292_v23 = vmul.f32 1.6732632, %v2008_v0  ;;  %v1248_v18 = vmul.f32 1.442695, %v2951_v41  ;;  %v1250_v46 = vmul.f32 1.442695, %v2961_v9 }
 0x336   : > { %v2217_v25 = vpop.eup %2216  ;;  %v1998_v26 = vadd.f32 -1.0, %v2215_v43  ;;  %v1293_v31 = vmul.f32 1.6732632, %v2009_v4  ;;  %v1193_v32 = vpop.f32.mrb[24].mxu1  ;;  %v1328_v7 = vmul.f32 1.050701, %v1308_v57  ;;  %v1309_v37 = vsel %vm1209_vm10, %v2893_v19, %v1289_v21 }
 0x337   : > { %v2219_v33 = vpop.eup %2218  ;;  %v1999_v3 = vadd.f32 -1.0, %v2217_v25  ;;  %v1312_v12 = vsel %vm1212_vm11, %v2897_v20, %v1292_v23  ;;  %v1195_v38 = vpop.f32.mrb[25].mxu1  ;;  %2226 = vpow2.f32 %v1248_v18  ;;  %v1329_v58 = vmul.f32 1.050701, %v1309_v37 }
 0x338   : > { %v1282_v53 = vmul.f32 1.6732632, %v1998_v26  ;;  %v2002_v27 = vadd.f32 -1.0, %v2219_v33  ;;  %v1332_v42 = vmul.f32 1.050701, %v1312_v12  ;;  %v1197_v6 = vpop.f32.mrb[26].mxu1  ;;  %v1313_v11 = vsel %vm1213_vm12, %v2901_v55, %v1293_v31 }
 0x339   : > { %v1283_v45 = vmul.f32 1.6732632, %v1999_v3  ;;  %v1333_v50 = vmul.f32 1.050701, %v1313_v11  ;;  %v1198_v34 = vpop.f32.mrb[27].mxu1  ;;  %2228 = vpow2.f32 %v1250_v46  ;;  %v2981_v13 = vadd.f32 %v1193_v32, %v1038_v17 }
 0x33a   : > { %v1302_v19 = vsel %vm1202_vm14, %v2905_v24, %v1282_v53  ;;  %v1286_v20 = vmul.f32 1.6732632, %v2002_v27  ;;  %v1344_v48 = vpack.c.bf16 %v1332_v42, %v1328_v7  ;;  %2230 = vpow2.f32 %v1252_v40 }
 0x33b   : > { %v2221_v51 = vpop.eup %2220  ;;  %v1322_v61 = vmul.f32 1.050701, %v1302_v19  ;;  %v1303_v24 = vsel %vm1203_vm2, %v2907_v28, %v1283_v45  ;;  %v1256_v52 = vmul.f32 1.442695, %v2981_v13  ;;  %v2993_v14 = vadd.f32 %v1195_v38, %v1038_v17 }
 0x33c   : > { %v1306_v55 = vsel %vm1206_vm15, %v2913_v59, %v1286_v20  ;;  %v2003_v44 = vadd.f32 -1.0, %v2221_v51  ;;  %v1341_v39 = vpack.c.bf16 %v1325_v5, %v1321_v54  ;;  %v1345_v16 = vpack.c.bf16 %v1333_v50, %v1329_v58 }
 0x33d   : > { %v1326_v2 = vmul.f32 1.050701, %v1306_v55  ;;  %v2223_v47 = vpop.eup %2222  ;;  %vm1207_vm3 = vcmp.gt.f32.partialorder %v2923_v15, 0.0  ;;  %2232 = vpow2.f32 %v1256_v52  ;;  %v1323_v0 = vmul.f32 1.050701, %v1303_v24  ;;  %v2139_v24 = vld [vmem:[%s3246_s7] sm:$0xff]  }
 0x33e   : > { %v1287_v56 = vmul.f32 1.6732632, %v2003_v44  ;;  %v2225_v30 = vpop.eup %2224  ;;  %v2006_v63 = vadd.f32 -1.0, %v2223_v47  ;;  %v1254_v57 = vmul.f32 1.442695, %v2991_v8  ;;  %1422 = vmatprep.subr.bf16.mxu0 %v1341_v39  ;;  %vm1210_vm4 = vcmp.gt.f32.partialorder %v2933_v60, 0.0  ;;  %v1370_v47 = vpop.permute.xlu1 %1369 }
 0x33f   : > { %v1342_v59 = vpack.c.bf16 %v1326_v2, %v1322_v61  ;;  %v2007_v4 = vadd.f32 -1.0, %v2225_v30  ;;  %v1258_v17 = vmul.f32 1.442695, %v2993_v14  ;;  %1423 = vmatpush1.bf16.msra.mxu0 %v1340_v10  ;;  %vm1214_vm0 = vcmp.gt.f32.partialorder %v2951_v41, 0.0  ;;  %v2140_v2 = vld [vmem:[%s3246_s7 + $0x8] sm:$0xff]  }
 0x340   : > { %v1307_v28 = vsel %vm1207_vm3, %v2923_v15, %v1287_v56  ;;  %v1290_v21 = vmul.f32 1.6732632, %v2006_v63  ;;  %2234 = vpow2.f32 %v1254_v57  ;;  %1424 = vmatprep.subr.bf16.mxu0 %v1345_v16  ;;  %vm1211_vm5 = vcmp.gt.f32.partialorder %v2937_v62, 0.0  ;;  %v2141_v52 = vld [vmem:[%s3246_s7 + $0x10] ss:$0 sps:$4 sm:$0xff]  }
 0x341   : > { %v1327_v35 = vmul.f32 1.050701, %v1307_v28  ;;  %v2227_v43 = vpop.eup %2226  ;;  %2236 = vpow2.f32 %v1258_v17  ;;  %v1291_v15 = vmul.f32 1.6732632, %v2007_v4  ;;  %vm1215_vm6 = vcmp.gt.f32.partialorder %v2961_v9, 0.0 }
 0x342   : > { %v2010_v5 = vadd.f32 -1.0, %v2227_v43  ;;  %v1310_v26 = vsel %vm1210_vm4, %v2933_v60, %v1290_v21  ;;  %vm1216_vm7 = vcmp.gt.f32.partialorder %v2958_v22, 0.0  ;;  %vm1218_vm8 = vcmp.gt.f32.partialorder %v2981_v13, 0.0 }
 0x343   : > { %v1343_v23 = vpack.c.bf16 %v1327_v35, %v1323_v0  ;;  %v2229_v25 = vpop.eup %2228  ;;  %1425 = vmatpush1.bf16.msra.mxu0 %v1344_v48  ;;  %v1330_v31 = vmul.f32 1.050701, %v1310_v26  ;;  %v1311_v32 = vsel %vm1211_vm5, %v2937_v62, %v1291_v15  ;;  %vm1217_vm9 = vcmp.gt.f32.partialorder %v2991_v8, 0.0 }
 0x344   : > { %v1294_v29 = vmul.f32 1.6732632, %v2010_v5  ;;  %v2231_v18 = vpop.eup %2230  ;;  %v2011_v49 = vadd.f32 -1.0, %v2229_v25  ;;  %v1331_v53 = vmul.f32 1.050701, %v1311_v32  ;;  %vm1219_vm10 = vcmp.gt.f32.partialorder %v2993_v14, 0.0 }
 0x345   : > { %1483 = vmatprep.subr.bf16.mxu1 %v1343_v23  ;;  %v2012_v10 = vadd.f32 -1.0, %v2231_v18  ;;  %vm1400_vm11 = vcmask 293888  }
 0x346   : > { %1484 = vmatpush1.bf16.msra.mxu1 %v1342_v59  ;;  %v1314_v36 = vsel %vm1214_vm0, %v2951_v41, %v1294_v29  ;;  %v1295_v3 = vmul.f32 1.6732632, %v2011_v49 }
 0x347   : > { %v1334_v33 = vmul.f32 1.050701, %v1314_v36  ;;  %v2233_v7 = vpop.eup %2232  ;;  %v1296_v60 = vmul.f32 1.6732632, %v2012_v10 }
 0x348   : > { %v1315_v12 = vsel %vm1215_vm6, %v2961_v9, %v1295_v3  ;;  %v2014_v38 = vadd.f32 -1.0, %v2233_v7 }
 0x349   : > { %v1346_v37 = vpack.c.bf16 %v1334_v33, %v1330_v31  ;;  %v1335_v27 = vmul.f32 1.050701, %v1315_v12  ;;  %v1316_v41 = vsel %vm1216_vm7, %v2958_v22, %v1296_v60 }
 0x34a   : > { %v2235_v42 = vpop.eup %2234  ;;  %v1336_v6 = vmul.f32 1.050701, %v1316_v41  ;;  %v1298_v45 = vmul.f32 1.6732632, %v2014_v38 }
 0x34b   : > { %v2237_v62 = vpop.eup %2236  ;;  %v2013_v11 = vadd.f32 -1.0, %v2235_v42  ;;  %v1347_v46 = vpack.c.bf16 %v1335_v27, %v1331_v53  ;;  %v1380_v42 = vpop.permute.xlu1 %1379 }
 0x34c   : > { %v1318_v40 = vsel %vm1218_vm8, %v2981_v13, %v1298_v45  ;;  %v2015_v19 = vadd.f32 -1.0, %v2237_v62  ;;  %v1348_v50 = vpack.c.bf16 %v1336_v6, %v1336_v6 }
 0x34d   : > { %v1338_v20 = vmul.f32 1.050701, %v1318_v40  ;;  %v1297_v9 = vmul.f32 1.6732632, %v2013_v11  ;;  %1485 = vmatprep.subr.bf16.mxu1 %v1347_v46 }
 0x34e   : > { %v1299_v48 = vmul.f32 1.6732632, %v2015_v19  ;;  %1486 = vmatpush1.bf16.msra.mxu1 %v1346_v37  ;;  %v1411_v13 = vsel %vm766_vm13, %v1348_v50, 0 }
 0x34f   : > { %v1317_v22 = vsel %vm1217_vm9, %v2991_v8, %v1297_v9  ;;  %v1350_v34 = vpack.c.bf16 %v1338_v20, %v1338_v20  ;;  %v1365_v8 = vpop.permute.xlu0 %1364 }
 0x350   : > { %v1337_v51 = vmul.f32 1.050701, %v1317_v22  ;;  %v1319_v54 = vsel %vm1219_vm10, %v2993_v14, %v1299_v48 }
 0x351   : > { %v1339_v58 = vmul.f32 1.050701, %v1319_v54  ;;  %v1417_v44 = vsel %vm766_vm13, %v1350_v34, 0 }
 0x352   : > { %v1349_v61 = vpack.c.bf16 %v1337_v51, %v1337_v51 }
 0x353   : > { %v1351_v55 = vpack.c.bf16 %v1339_v58, %v1339_v58  ;;  %v1375_v49 = vpop.permute.xlu0 %1374 }
 0x354   : > { %2019 = vmatprep.subr.msk.bf16.mxu0 %vm766_vm13, %v1349_v61 }
 0x355   : > { %2023 = vmatprep.subr.msk.bf16.mxu1 %vm766_vm13, %v1351_v55  ;;  %1427 = vmatpush1.bf16.msra.mxu0 %v1411_v13 }
 0x356   : > { %1488 = vmatpush1.bf16.msra.mxu1 %v1417_v44 }
 0x358   : > { %2020 = vmatmul.mubr.msk.bf16.vlgmr.msra.gmra.mrb[28].mxu0 %vm1400_vm11, %v2139_v24 }
 0x359   : > { %2024 = vmatmul.mubr.msk.bf16.vlgmr.msra.gmra.mrb[28].mxu1 %vm1400_vm11, %v2139_v24  ;;  %1464 = vmatprep.mubr.bf16.mxu0 %v2380_v1 }
 0x35a   : > { %1525 = vmatprep.mubr.bf16.mxu1 %v2380_v1 }
 0x360   : > { %2021 = vmatmul.mubr.msk.bf16.gmra.mrb[32].mxu0 %vm1400_vm11, %v2140_v2 }
 0x361   : > { %2025 = vmatmul.mubr.msk.bf16.gmra.mrb[32].mxu1 %vm1400_vm11, %v2140_v2  ;;  %1474 = vmatprep.mubr.bf16.mxu0 %v2380_v1 }
 0x362   : > { %1535 = vmatprep.mubr.bf16.mxu1 %v2380_v1 }
 0x368   : > { %2022 = vmatmul.mubr.msk.bf16.gmra.mrb[36].mxu0 %vm1400_vm11, %v2141_v52 }
 0x369   : > { %2026 = vmatmul.mubr.msk.bf16.gmra.mrb[36].mxu1 %vm1400_vm11, %v2141_v52  ;;  %1755 = vmatprep.mubr.bf16.mxu0 %v2380_v1 }
 0x36a   : > { %1796 = vmatprep.mubr.bf16.mxu1 %v2380_v1 }
 0x42b   : > { %v1456_v56 = vpop.f32.mrb[28].mxu0 }
 0x42c   : > { %v3037_v14 = vadd.f32 %v1456_v56, %v1365_v8  ;;  %v1517_v39 = vpop.f32.mrb[28].mxu1  ;;  %v1458_v16 = vpop.f32.mrb[29].mxu0 }
 0x42d   : > { %v3039_v30 = vadd.f32 %v1517_v39, %v1365_v8  ;;  %v3041_v59 = vadd.f32 %v1458_v16, %v1365_v8  ;;  %v1519_v63 = vpop.f32.mrb[29].mxu1  ;;  %v1460_v0 = vpop.f32.mrb[30].mxu0 }
 0x42e   : > { %v1564_v28 = vmul.f32 1.442695, %v3037_v14  ;;  %v3044_v4 = vadd.f32 %v1519_v63, %v1365_v8  ;;  %v3046_v57 = vadd.f32 %v1460_v0, %v1370_v47  ;;  %v1521_v1 = vpop.f32.mrb[30].mxu1  ;;  %v1462_v35 = vpop.f32.mrb[31].mxu0  ;;  %vm1544_vm13 = vcmp.gt.f32.partialorder %v3037_v14, 0.0 }
 0x42f   : > { %v1568_v21 = vmul.f32 1.442695, %v3039_v30  ;;  %v1566_v17 = vmul.f32 1.442695, %v3041_v59  ;;  %v1523_v5 = vpop.f32.mrb[31].mxu1  ;;  %v3052_v15 = vadd.f32 %v1521_v1, %v1370_v47  ;;  %v3054_v25 = vadd.f32 %v1462_v35, %v1370_v47 }
 0x430   : > { %2238 = vpow2.f32 %v1564_v28  ;;  %v1570_v43 = vmul.f32 1.442695, %v3044_v4  ;;  %v1572_v23 = vmul.f32 1.442695, %v3046_v57  ;;  %v3056_v26 = vadd.f32 %v1523_v5, %v1370_v47 }
 0x431   : > { %2240 = vpow2.f32 %v1568_v21  ;;  %v1576_v29 = vmul.f32 1.442695, %v3052_v15  ;;  %v1574_v36 = vmul.f32 1.442695, %v3054_v25  ;;  %vm1546_vm12 = vcmp.gt.f32.partialorder %v3039_v30, 0.0 }
 0x432   : > { %2242 = vpow2.f32 %v1566_v17  ;;  %v1578_v10 = vmul.f32 1.442695, %v3056_v26  ;;  %vm1545_vm14 = vcmp.gt.f32.partialorder %v3041_v59, 0.0  ;;  %vm1548_vm15 = vcmp.gt.f32.partialorder %v3046_v57, 0.0 }
 0x433   : > { %2244 = vpow2.f32 %v1570_v43  ;;  %v1466_v18 = vpop.f32.mrb[32].mxu0  ;;  %vm1547_vm2 = vcmp.gt.f32.partialorder %v3044_v4, 0.0  ;;  %vm1550_vm3 = vcmp.gt.f32.partialorder %v3052_v15, 0.0  ;;  %vm1549_vm4 = vcmp.gt.f32.partialorder %v3054_v25, 0.0 }
 0x434   : > { %2246 = vpow2.f32 %v1572_v23  ;;  %v1527_v31 = vpop.f32.mrb[32].mxu1  ;;  %v3061_v32 = vadd.f32 %v1466_v18, %v1375_v49  ;;  %v1468_v3 = vpop.f32.mrb[33].mxu0  ;;  %vm1551_vm0 = vcmp.gt.f32.partialorder %v3056_v26, 0.0 }
 0x435   : > { %2248 = vpow2.f32 %v1576_v29  ;;  %v3063_v33 = vadd.f32 %v1527_v31, %v1375_v49  ;;  %v1529_v7 = vpop.f32.mrb[33].mxu1  ;;  %v3065_v60 = vadd.f32 %v1468_v3, %v1375_v49  ;;  %v1470_v12 = vpop.f32.mrb[34].mxu0 }
 0x436   : > { %2250 = vpow2.f32 %v1574_v36  ;;  %v3067_v37 = vadd.f32 %v1529_v7, %v1375_v49  ;;  %v1531_v38 = vpop.f32.mrb[34].mxu1  ;;  %v1580_v53 = vmul.f32 1.442695, %v3061_v32  ;;  %v1472_v27 = vpop.f32.mrb[35].mxu0  ;;  %v3072_v62 = vadd.f32 %v1470_v12, %v1380_v42 }
 0x437   : > { %2252 = vpow2.f32 %v1578_v10  ;;  %v1533_v41 = vpop.f32.mrb[35].mxu1  ;;  %v1584_v6 = vmul.f32 1.442695, %v3063_v33  ;;  %v1582_v45 = vmul.f32 1.442695, %v3065_v60  ;;  %v3074_v11 = vadd.f32 %v1531_v38, %v1380_v42 }
 0x438   : > { %2254 = vpow2.f32 %v1580_v53  ;;  %v1586_v40 = vmul.f32 1.442695, %v3067_v37  ;;  %v1588_v9 = vmul.f32 1.442695, %v3072_v62  ;;  %v3080_v48 = vadd.f32 %v1472_v27, %v1380_v42 }
 0x439   : > { %2256 = vpow2.f32 %v1584_v6  ;;  %v1592_v51 = vmul.f32 1.442695, %v3074_v11  ;;  %vm1552_vm5 = vcmp.gt.f32.partialorder %v3061_v32, 0.0  ;;  %v3107_v29 = vadd.f32 %v1533_v41, %v1380_v42 }
 0x43a   : > { %v2239_v46 = vpop.eup %2238  ;;  %2258 = vpow2.f32 %v1582_v45  ;;  %v1590_v63 = vmul.f32 1.442695, %v3080_v48  ;;  %vm1554_vm6 = vcmp.gt.f32.partialorder %v3063_v33, 0.0  ;;  %vm1553_vm7 = vcmp.gt.f32.partialorder %v3065_v60, 0.0 }
 0x43b   : > { %v2241_v19 = vpop.eup %2240  ;;  %v2027_v20 = vadd.f32 -1.0, %v2239_v46  ;;  %v3082_v50 = vpop.f32.mrb[36].mxu0  ;;  %2260 = vpow2.f32 %v1588_v9  ;;  %vm1556_vm8 = vcmp.gt.f32.partialorder %v3072_v62, 0.0  ;;  %vm1558_vm9 = vcmp.gt.f32.partialorder %v3074_v11, 0.0 }
 0x43c   : > { %v2243_v22 = vpop.eup %2242  ;;  %v2029_v34 = vadd.f32 -1.0, %v2241_v19  ;;  %v3087_v54 = vpop.f32.mrb[36].mxu1  ;;  %2262 = vpow2.f32 %v1592_v51  ;;  %vm1557_vm10 = vcmp.gt.f32.partialorder %v3080_v48, 0.0  ;;  %vm1555_vm11 = vcmp.gt.f32.partialorder %v3067_v37, 0.0 }
 0x43d   : > { %v3089_v58 = vpop.f32.mrb[37].mxu0  ;;  %v2245_v61 = vpop.eup %2244  ;;  %v1624_v13 = vmul.f32 1.6732632, %v2027_v20  ;;  %v2028_v55 = vadd.f32 -1.0, %v2243_v22  ;;  %2264 = vpow2.f32 %v1586_v40 }
 0x43e   : > { %v3093_v44 = vpop.f32.mrb[37].mxu1  ;;  %v1480_v24 = vpop.f32.mrb[38].mxu0  ;;  %v1626_v52 = vmul.f32 1.6732632, %v2029_v34  ;;  %v2030_v8 = vadd.f32 -1.0, %v2245_v61  ;;  %2266 = vpow2.f32 %v1590_v63 }
 0x43f   : > { %v2247_v2 = vpop.eup %2246  ;;  %v1541_v47 = vpop.f32.mrb[38].mxu1  ;;  %v1644_v39 = vsel %vm1544_vm13, %v3037_v14, %v1624_v13  ;;  %v1625_v21 = vmul.f32 1.6732632, %v2028_v55  ;;  %vm1559_vm13 = vcmp.gt.f32.partialorder %v3107_v29, 0.0 }
 0x440   : > { %v2249_v56 = vpop.eup %2248  ;;  %v2031_v16 = vadd.f32 -1.0, %v2247_v2  ;;  %v1481_v0 = vpop.f32.mrb[39].mxu0  ;;  %v1646_v35 = vsel %vm1546_vm12, %v3039_v30, %v1626_v52  ;;  %v3105_v5 = vmul.f32 1.050701, %v1644_v39  ;;  %v1627_v18 = vmul.f32 1.6732632, %v2030_v8 }
 0x441   : > { %v1542_v28 = vpop.f32.mrb[39].mxu1  ;;  %v2251_v1 = vpop.eup %2250  ;;  %v2033_v17 = vadd.f32 -1.0, %v2249_v56  ;;  %v3110_v30 = vmul.f32 1.050701, %v1646_v35  ;;  %v1645_v42 = vsel %vm1545_vm14, %v3041_v59, %v1625_v21 }
 0x442   : > { %v2253_v43 = vpop.eup %2252  ;;  %v1628_v14 = vmul.f32 1.6732632, %v2031_v16  ;;  %v2032_v23 = vadd.f32 -1.0, %v2251_v1  ;;  %v1647_v46 = vsel %vm1547_vm2, %v3044_v4, %v1627_v18  ;;  %v1665_v4 = vmul.f32 1.050701, %v1645_v42  ;;  %v1385_v13 = vpop.permute.xlu0 %1384 }
 0x443   : > { %v1630_v49 = vmul.f32 1.6732632, %v2033_v17  ;;  %v2034_v36 = vadd.f32 -1.0, %v2253_v43  ;;  %v2255_v10 = vpop.eup %2254  ;;  %v1667_v55 = vmul.f32 1.050701, %v1647_v46  ;;  %v3149_v56 = vadd.f32 %v3082_v50, %v1385_v13 }
 0x444   : > { %v1648_v31 = vsel %vm1548_vm15, %v3046_v57, %v1628_v14  ;;  %v1629_v3 = vmul.f32 1.6732632, %v2032_v23  ;;  %v2257_v7 = vpop.eup %2256  ;;  %v2035_v27 = vadd.f32 -1.0, %v2255_v10  ;;  %v1594_v57 = vmul.f32 1.442695, %v3107_v29 }
 0x445   : > { %v3115_v12 = vmul.f32 1.050701, %v1648_v31  ;;  %v1650_v38 = vsel %vm1550_vm3, %v3052_v15, %v1630_v49  ;;  %v1631_v53 = vmul.f32 1.6732632, %v2034_v36  ;;  %v2259_v41 = vpop.eup %2258  ;;  %v2037_v45 = vadd.f32 -1.0, %v2257_v7 }
 0x446   : > { %v3123_v6 = vmul.f32 1.050701, %v1650_v38  ;;  %v1632_v15 = vmul.f32 1.6732632, %v2035_v27  ;;  %v2261_v19 = vpop.eup %2260  ;;  %v1649_v20 = vsel %vm1549_vm4, %v3054_v25, %v1629_v3  ;;  %v2036_v22 = vadd.f32 -1.0, %v2259_v41 }
 0x447   : > { %v1684_v40 = vpack.c.bf16 %v3115_v12, %v3105_v5  ;;  %v1634_v9 = vmul.f32 1.6732632, %v2037_v45  ;;  %v2263_v34 = vpop.eup %2262  ;;  %v2039_v51 = vadd.f32 -1.0, %v2261_v19  ;;  %2268 = vpow2.f32 %v1594_v57 }
 0x448   : > { %v1686_v59 = vpack.c.bf16 %v3123_v6, %v3110_v30  ;;  %v2265_v61 = vpop.eup %2264  ;;  %v1651_v24 = vsel %vm1551_vm0, %v3056_v26, %v1631_v53  ;;  %v1652_v2 = vsel %vm1552_vm5, %v3061_v32, %v1632_v15  ;;  %v2041_v25 = vadd.f32 -1.0, %v2263_v34 }
 0x449   : > { %v1669_v52 = vmul.f32 1.050701, %v1649_v20  ;;  %v1654_v8 = vsel %vm1554_vm6, %v3063_v33, %v1634_v9  ;;  %v1636_v47 = vmul.f32 1.6732632, %v2039_v51  ;;  %v1633_v39 = vmul.f32 1.6732632, %v2036_v22  ;;  %v2267_v33 = vpop.eup %2266 }
 0x44a   : > { %v1638_v16 = vmul.f32 1.6732632, %v2041_v25  ;;  %v3152_v63 = vadd.f32 %v3087_v54, %v1385_v13  ;;  %v3155_v26 = vadd.f32 %v3089_v58, %v1385_v13  ;;  %v1671_v0 = vmul.f32 1.050701, %v1651_v24 }
 0x44b   : > { %v1672_v32 = vmul.f32 1.050701, %v1652_v2  ;;  %v2038_v28 = vadd.f32 -1.0, %v2265_v61  ;;  %v1656_v1 = vsel %vm1556_vm8, %v3072_v62, %v1636_v47  ;;  %v1674_v35 = vmul.f32 1.050701, %v1654_v8 }
 0x44c   : > { %v1676_v21 = vmul.f32 1.050701, %v1656_v1  ;;  %v1658_v50 = vsel %vm1558_vm9, %v3074_v11, %v1638_v16  ;;  %v1596_v54 = vmul.f32 1.442695, %v3149_v56  ;;  %v2040_v58 = vadd.f32 -1.0, %v2267_v33 }
 0x44d   : > { %v1678_v17 = vmul.f32 1.050701, %v1658_v50  ;;  %v1600_v43 = vmul.f32 1.442695, %v3152_v63  ;;  %v1653_v5 = vsel %vm1553_vm7, %v3065_v60, %v1633_v39  ;;  %v1598_v14 = vmul.f32 1.442695, %v3155_v26 }
 0x44e   : > { %v1688_v62 = vpack.c.bf16 %v1676_v21, %v1672_v32  ;;  %2270 = vpow2.f32 %v1596_v54  ;;  %v1637_v18 = vmul.f32 1.6732632, %v2040_v58  ;;  %v1540_v11 = vadd.f32 %v3093_v44, %v1385_v13  ;;  %v1696_v39 = vld [vmem:[%s3248_s9] sm:$0x1] }
 0x44f   : > { %v1690_v23 = vpack.c.bf16 %v1678_v17, %v1674_v35  ;;  %2272 = vpow2.f32 %v1600_v43  ;;  %v1635_v49 = vmul.f32 1.6732632, %v2038_v28  ;;  %v1685_v36 = vpack.c.bf16 %v1669_v52, %v1665_v4  ;;  %v1701_v28 = vpop.permute.xlu1 %1700 }
 0x450   : > { %2274 = vpow2.f32 %v1598_v14  ;;  %v1687_v10 = vpack.c.bf16 %v1671_v0, %v1667_v55  ;;  %v1657_v31 = vsel %vm1557_vm10, %v3080_v48, %v1637_v18  ;;  %v1602_v3 = vmul.f32 1.442695, %v1540_v11 }
 0x451   : > { %v2269_v30 = vpop.eup %2268  ;;  %v1673_v60 = vmul.f32 1.050701, %v1653_v5  ;;  %v1677_v7 = vmul.f32 1.050701, %v1657_v31  ;;  %1723 = vmatprep.subr.bf16.mxu0 %v1685_v36  ;;  %v1655_v44 = vsel %vm1555_vm11, %v3067_v37, %v1635_v49  ;;  %vm1560_vm12 = vcmp.gt.f32.partialorder %v3149_v56, 0.0 }
 0x452   : > { %v2042_v12 = vadd.f32 -1.0, %v2269_v30  ;;  %1764 = vmatprep.subr.bf16.mxu1 %v1687_v10  ;;  %2276 = vpow2.f32 %v1602_v3  ;;  %1724 = vmatpush1.bf16.msra.mxu0 %v1684_v40  ;;  %v1675_v48 = vmul.f32 1.050701, %v1655_v44  ;;  %vm1562_vm14 = vcmp.gt.f32.partialorder %v3152_v63, 0.0 }
 0x453   : > { %1765 = vmatpush1.bf16.msra.mxu1 %v1686_v59  ;;  %v1689_v53 = vpack.c.bf16 %v1677_v7, %v1673_v60  ;;  %vm1561_vm15 = vcmp.gt.f32.partialorder %v3155_v26, 0.0  ;;  %vm1563_vm2 = vcmp.gt.f32.partialorder %v1540_v11, 0.0  ;;  %vm1707_vm3 = vcmask 326656  }
 0x454   : > { %v1639_v38 = vmul.f32 1.6732632, %v2042_v12  ;;  %v1703_v16 = vlaneseq  ;;  %v2382_v0 = vmov 1966171168  }
 0x455   : > { %1725 = vmatprep.subr.bf16.mxu0 %v1689_v53  ;;  %v1812_v32 = vunpack.c.l.s4 %v2382_v0 }
 0x456   : > { %v1659_v27 = vsel %vm1559_vm13, %v3107_v29, %v1639_v38  ;;  %1726 = vmatpush1.bf16.msra.mxu0 %v1688_v62 }
 0x457   : > { %v1679_v41 = vmul.f32 1.050701, %v1659_v27  ;;  %v1813_v1 = vunpack.c.0.s8 %v1812_v32 }
 0x458   : > { %v2271_v42 = vpop.eup %2270 }
 0x459   : > { %v2273_v6 = vpop.eup %2272  ;;  %v2043_v45 = vadd.f32 -1.0, %v2271_v42  ;;  %v1691_v57 = vpack.c.bf16 %v1679_v41, %v1675_v48 }
 0x45a   : > { %v2275_v46 = vpop.eup %2274  ;;  %v2045_v15 = vadd.f32 -1.0, %v2273_v6 }
 0x45b   : > { %v1640_v40 = vmul.f32 1.6732632, %v2043_v45  ;;  %v2044_v19 = vadd.f32 -1.0, %v2275_v46  ;;  %1766 = vmatprep.subr.bf16.mxu1 %v1691_v57 }
 0x45c   : > { %v1642_v37 = vmul.f32 1.6732632, %v2045_v15  ;;  %1767 = vmatpush1.bf16.msra.mxu1 %v1690_v23  ;;  %v2277_v59 = vpop.eup %2276 }
 0x45d   : > { %v1660_v29 = vsel %vm1560_vm12, %v3149_v56, %v1640_v40  ;;  %v1641_v20 = vmul.f32 1.6732632, %v2044_v19  ;;  %v2046_v34 = vadd.f32 -1.0, %v2277_v59 }
 0x45e   : > { %v1680_v9 = vmul.f32 1.050701, %v1660_v29  ;;  %v1662_v22 = vsel %vm1562_vm14, %v3152_v63, %v1642_v37  ;;  %v1704_v63 = vshrl.u32 %v1703_v16, 7 }
 0x45f   : > { %v1682_v4 = vmul.f32 1.050701, %v1662_v22  ;;  %v1661_v51 = vsel %vm1561_vm15, %v3155_v26, %v1641_v20  ;;  %v1643_v13 = vmul.f32 1.6732632, %v2046_v34 }
 0x460   : > { %v1681_v61 = vmul.f32 1.050701, %v1661_v51  ;;  %v1692_v55 = vpack.c.bf16 %v1680_v9, %v1680_v9  ;;  %v1705_v26 = vsub.s32 0, %v1704_v63  ;;  %v1816_v58 = vsub.s32 %v1813_v1, %v1704_v63 }
 0x461   : > { %v1694_v24 = vpack.c.bf16 %v1682_v4, %v1682_v4  ;;  %v1663_v25 = vsel %vm1563_vm2, %v1540_v11, %v1643_v13 }
 0x462   : > { %v1693_v2 = vpack.c.bf16 %v1681_v61, %v1681_v61  ;;  %v1712_v52 = vsel %vm1063_vm1, %v1692_v55, 0  ;;  %v1683_v8 = vmul.f32 1.050701, %v1663_v25  ;;  %v1706_v33 = vrot.slane %v1701_v28, %v1705_v26 }
 0x463   : > { %v1718_v56 = vsel %vm1063_vm1, %v1694_v24, 0 }
 0x464   : > { %2047 = vmatprep.subr.msk.bf16.mxu0 %vm1063_vm1, %v1693_v2  ;;  %v1695_v47 = vpack.c.bf16 %v1683_v8, %v1683_v8 }
 0x465   : > { %1728 = vmatpush1.bf16.msra.mxu0 %v1712_v52 }
 0x466   : > { %2049 = vmatprep.subr.msk.bf16.mxu1 %vm1063_vm1, %v1695_v47  ;;  %vm1836_vm1 = vcmp.lt.s32.totalorder %v1703_v16, 512 }
 0x467   : > { %1769 = vmatpush1.bf16.msra.mxu1 %v1718_v56 }
 0x468   : > { %2048 = vmatmul.mubr.msk.bf16.vlgmr.msra.gmra.mrb[40].mxu0 %vm1707_vm3, %v1696_v39 }
 0x46a   : > { %2050 = vmatmul.mubr.msk.bf16.vlgmr.msra.gmra.mrb[40].mxu1 %vm1707_vm3, %v1696_v39 }
 0x53b   : > { %v1757_v35 = vpop.f32.mrb[40].mxu0 }
 0x53c   : > { %v1758_v21 = vadd.f32 %v1757_v35, %v1706_v33  ;;  %v1759_v50 = vpop.f32.mrb[41].mxu0 }
 0x53d   : > { %v1760_v54 = vadd.f32 %v1759_v50, %v1706_v33  ;;  %v1761_v17 = vpop.f32.mrb[42].mxu0  ;;  %v1798_v43 = vpop.f32.mrb[40].mxu1 }
 0x53e   : > { %v1762_v5 = vpop.f32.mrb[43].mxu0  ;;  %v1799_v62 = vadd.f32 %v1798_v43, %v1706_v33  ;;  %v1800_v23 = vpop.f32.mrb[41].mxu1 }
 0x53f   : > { %v1809_v14 = vcombine.low %v1758_v21, %v1760_v54  ;;  %v1801_v18 = vadd.f32 %v1800_v23, %v1706_v33  ;;  %v1802_v11 = vpop.f32.mrb[42].mxu1 }
 0x540   : > { %v1803_v49 = vpop.f32.mrb[43].mxu1 }
 0x541   : > { %v1817_v36 = vrot.slane %v1809_v14, %v1816_v58  ;;  %v1810_v10 = vcombine.low %v1799_v62, %v1801_v18 }
 0x543   : > { %v1824_v30 = vrot.slane %v1810_v10, %v1816_v58 }
 0x545   : > { %v1825_v31 = vcombine.low %v1817_v36, %v1824_v30 }
 0x547   : > { %v1832_v3 = vrot.slane %v1825_v31, %v1816_v58 }
 0x549   : > { %1838 = vst.msk [vmem:[%s406_s23] sm:$0xf] %vm1836_vm1, %v1832_v3 }
 0x54a   : > { %2321 = shalt.err (!%p2318_p2)
}
 0x54b   : > { %s2322_s14 = scalar_lea.hbm %s3196_s18, 64  ;;  %s2326_s12 = scalar_lea.hbm %s3250_s11, 256 }
 0x54c   : > { %p2323_p4 = scmp.ne.s32.totalorder %s3196_s18, %s2322_s14  ;;  %p2327_p13 = scmp.lt.u32.totalorder %s3196_s18, %s3250_s11 }
 0x54d   : > { %p2328_p1 = scmp.lt.u32.totalorder %s2326_s12, %s2322_s14  ;;  %p2330_p6 = scmp.lt.u32.totalorder %s2322_s14, %s3196_s18 }
 0x54e   : > { %p2324_p5 = pnand %p2323_p4, %p3260_p10 }
 0x54f   : > { %p2329_p3 = por %p2328_p1, %p2327_p13 }
 0x550   : > { %p2325_p7 = pneg %p2324_p5 }
 0x551   : > { %p2331_p11 = por %p2330_p6, %p2329_p3 }
 0x553   : > { %p2332_p12 = pnand %p2331_p11, %p2325_p7 }
 0x555   : > { %2335 = shalt.err (!%p2332_p12)
}
 0x556   : > { %2062 = dma.vmem_to_hbm [thread:$0]  (%p3260_p10), %s3198_s13, 64, %s3196_s18, %s1840_s25  }
 0x557 PF: > { %p2073_p8 = scmp.ge.s32.totalorder %s2374_s22, 2  ;;  %s1866_s17 = sand.u32 1, %s2362_s19  }
 0x558   : > { %p3261_p9 = scmp.ne.s32.totalorder %s3257_s30, 0  ;;  %s1867_s26 = scalar_lea.sflag [#allocation5], %s1866_s17 }
 0x55a   : > { %p2069_p0 = pnand %p2073_p8, %p3261_p9 }
 0x55c   : > { %2357 = dma.done.wait (!%p2069_p0), %s1867_s26, 64  }
 0x55d   : > { %2359 = vsyncadd (!%p2069_p0), %s1867_s26, 4294967232  ;;  %s3262_s10 = sld [smem:[#allocation9_spill]]  ;;  %s3263_s21 = sld [smem:[#allocation10_spill]] }
 0x55e   : > { %p26_p2 = scmp.ge.s32.totalorder %s2472_s24, 6   ;;  %s3264_s19 = smov %s2366_s20 }
 0x55f   : > { %s3266_s22 = smov %s2472_s24 }
 0x560   :  { %28 = sbr.rel (!%p26_p2) target bundleno = 8 (0x8), region = 109 }
 0x563   : > { %s3265_s20 = smov %s3262_s10 }
 0x567   :  { %1872 = vsyncpa [#allocation4], 1 }
 0x568   :  { %1874 = vsyncpa [#allocation4 + $0x1], 1 }
 0x569   :  { %1875 = vsyncpa [#allocation5], 1 }
 0x56a   :  { %1877 = vsyncpa [#allocation5 + $0x1], 1 }

</bundles_post_ra>
